<compile_context>
chip_gen: v5e
topology: v5e:2x2
jax: 0.10.0
libtpu: 0.0.40
codegen_flags: <defaults>
</compile_context>

<pallas_src>
import math

import jax
import jax.numpy as jnp
import numpy as np
from jax import lax
from jax.experimental import pallas as pl
from jax.experimental.pallas import tpu as pltpu


# ----------------------------------------------------------------------------
# Pallas kernel: entire RITS-I recurrence in a single invocation.
# ----------------------------------------------------------------------------
def _rits_kernel(
    vals_ref, masks_ref, deltas_ref,        # (T, B, F) each
    labels_ref, istrain_ref,                # (B, 1) each
    wtd_ref, btd_ref,                       # temporal decay  (F, H), (1, H)
    wreg_ref, breg_ref,                     # regression      (H, F), (1, F)
    wx_ref, wm_ref, wh_ref, bg_ref,         # fused LSTM gates (F,4H),(F,4H),(H,4H),(1,4H)
    wout_ref, bout_ref,                     # output head     (H, 1), (1, 1)
    imput_ref, pred_ref, xloss_ref, yloss_ref):   # outputs
  T, B, F = vals_ref.shape
  H = wtd_ref.shape[1]

  # Load weights once; reused by every unrolled time step.
  wtd = wtd_ref[...]
  btd = btd_ref[...]
  wreg = wreg_ref[...]
  breg = breg_ref[...]
  wx = wx_ref[...]
  wm = wm_ref[...]
  wh = wh_ref[...]
  bg = bg_ref[...]

  def step(t, carry):
    h, c, xl = carry
    x = vals_ref[t]      # (B, F)
    m = masks_ref[t]     # (B, F)
    d = deltas_ref[t]    # (B, F)

    # temporal decay: gamma = exp(-relu(d @ W_td^T + b_td))
    gamma = jnp.exp(-jax.nn.relu(
        jnp.dot(d, wtd, preferred_element_type=jnp.float32) + btd))
    h = h * gamma

    # regression: x_h = h @ W_reg^T + b_reg
    x_h = jnp.dot(h, wreg, preferred_element_type=jnp.float32) + breg
    x_c = m * x + (1.0 - m) * x_h

    # masked L1 imputation loss, normalised per step (f32 accumulation)
    num = jnp.sum(jnp.abs(x - x_h) * m, keepdims=True)     # (1, 1)
    den = jnp.sum(m, keepdims=True) + 1e-5                 # (1, 1)
    xl = xl + num * pl.reciprocal(den, approx=True)

    # fused LSTM gates (PyTorch order i, f, g, o); LSTM input = [x_c, m]
    gates = (jnp.dot(x_c, wx, preferred_element_type=jnp.float32)
             + jnp.dot(m, wm, preferred_element_type=jnp.float32)
             + jnp.dot(h, wh, preferred_element_type=jnp.float32)
             + bg)                                          # (B, 4H)
    i_g = jax.nn.sigmoid(gates[:, 0 * H:1 * H])
    f_g = jax.nn.sigmoid(gates[:, 1 * H:2 * H])
    g_g = jnp.tanh(gates[:, 2 * H:3 * H])
    o_g = jax.nn.sigmoid(gates[:, 3 * H:4 * H])

    c_new = f_g * c + i_g * g_g
    h_new = o_g * jnp.tanh(c_new)

    imput_ref[t] = x_c                                      # VMEM-resident slab
    return h_new, c_new, xl

  h0 = jnp.zeros((B, H), jnp.float32)
  c0 = jnp.zeros((B, H), jnp.float32)
  xl0 = jnp.zeros((1, 1), jnp.float32)
  h, c, xl = lax.fori_loop(0, T, step, (h0, c0, xl0), unroll=True)

  xloss_ref[...] = xl

  # output head, stable BCE-with-logits, sigmoid predictions — written once
  y_h = (jnp.dot(h, wout_ref[...], preferred_element_type=jnp.float32)
         + bout_ref[...])                                   # (B, 1)
  labels = labels_ref[...]
  is_train = istrain_ref[...]
  max_val = jnp.maximum(-y_h, 0.0)
  bce = (y_h - y_h * labels + max_val
         + jnp.log(jnp.exp(-max_val) + jnp.exp(-y_h - max_val)))
  den_y = jnp.sum(is_train, keepdims=True) + 1e-5
  yloss_ref[...] = (jnp.sum(bce * is_train, keepdims=True)
                    * pl.reciprocal(den_y, approx=True))
  pred_ref[...] = jax.nn.sigmoid(y_h)


# ----------------------------------------------------------------------------
# Wrapper: parameter packing + pallas_call (no grid; everything VMEM-resident)
# ----------------------------------------------------------------------------
def rits_forward_pallas(values, masks, deltas, labels, is_train, params,
                        impute_weight, label_weight):
  B, T, F = values.shape
  H = params["td_W"].shape[0]
  f32 = jnp.float32

  # time-major sequence tensors
  v_t = jnp.transpose(values, (1, 0, 2)).astype(f32)
  m_t = jnp.transpose(masks, (1, 0, 2)).astype(f32)
  d_t = jnp.transpose(deltas, (1, 0, 2)).astype(f32)
  labels = labels.astype(f32)
  is_train = is_train.astype(f32)

  # pre-transpose / pack parameters so the kernel does plain x @ W
  wtd = params["td_W"].T.astype(f32)               # (F, H)
  btd = params["td_b"].reshape(1, H).astype(f32)
  wreg = params["reg_W"].T.astype(f32)             # (H, F)
  breg = params["reg_b"].reshape(1, F).astype(f32)
  Wih, Whh = params["lstm_W_ih"], params["lstm_W_hh"]
  wx = Wih[:, :F].T.astype(f32)                    # (F, 4H)  (x_c half)
  wm = Wih[:, F:].T.astype(f32)                    # (F, 4H)  (mask half)
  wh = Whh.T.astype(f32)                           # (H, 4H)
  bgate = (params["lstm_b_ih"] + params["lstm_b_hh"]).reshape(1, 4 * H).astype(f32)
  wout = params["out_W"].T.astype(f32)             # (H, 1)
  bout = params["out_b"].reshape(1, 1).astype(f32)

  vmem = pl.BlockSpec(memory_space=pltpu.MemorySpace.VMEM)
  n_inputs = 15
  out_shape = [
      jax.ShapeDtypeStruct((T, B, F), f32),        # imputations (time-major)
      jax.ShapeDtypeStruct((B, 1), f32),           # predictions
      jax.ShapeDtypeStruct((1, 1), f32),           # x_loss
      jax.ShapeDtypeStruct((1, 1), f32),           # y_loss
  ]

  imput_t, preds, x_loss, y_loss = pl.pallas_call(
      _rits_kernel,
      out_shape=out_shape,
      in_specs=[vmem] * n_inputs,
      out_specs=[vmem] * 4,
  )(v_t, m_t, d_t, labels, is_train,
    wtd, btd, wreg, breg,
    wx, wm, wh, bgate,
    wout, bout)

  imputations = jnp.transpose(imput_t, (1, 0, 2))  # back to (B, T, F)
  loss = x_loss[0, 0] * impute_weight + y_loss[0, 0] * label_weight
  return loss, preds, imputations


# ----------------------------------------------------------------------------
# Pure-JAX reference (mirrors the PyTorch forward) for validation
# ----------------------------------------------------------------------------
def rits_forward_reference(values, masks, deltas, labels, is_train, params,
                           impute_weight, label_weight):
  B, T, F = values.shape
  H = params["td_W"].shape[0]
  h = jnp.zeros((B, H), jnp.float32)
  c = jnp.zeros((B, H), jnp.float32)
  x_loss = 0.0
  imps = []
  Wih, Whh = params["lstm_W_ih"], params["lstm_W_hh"]
  bih, bhh = params["lstm_b_ih"], params["lstm_b_hh"]
  for t in range(T):
    x, m, d = values[:, t, :], masks[:, t, :], deltas[:, t, :]
    gamma = jnp.exp(-jax.nn.relu(d @ params["td_W"].T + params["td_b"]))
    h = h * gamma
    x_h = h @ params["reg_W"].T + params["reg_b"]
    x_c = m * x + (1.0 - m) * x_h
    x_loss = x_loss + jnp.sum(jnp.abs(x - x_h) * m) / (jnp.sum(m) + 1e-5)
    inp = jnp.concatenate([x_c, m], axis=1)
    gates = inp @ Wih.T + bih + h @ Whh.T + bhh
    i_g = jax.nn.sigmoid(gates[:, 0:H])
    f_g = jax.nn.sigmoid(gates[:, H:2 * H])
    g_g = jnp.tanh(gates[:, 2 * H:3 * H])
    o_g = jax.nn.sigmoid(gates[:, 3 * H:4 * H])
    c = f_g * c + i_g * g_g
    h = o_g * jnp.tanh(c)
    imps.append(x_c[:, None, :])
  imputations = jnp.concatenate(imps, axis=1)
  y_h = h @ params["out_W"].T + params["out_b"]
  max_val = jnp.maximum(-y_h, 0.0)
  bce = (y_h - y_h * labels + max_val
         + jnp.log(jnp.exp(-max_val) + jnp.exp(-y_h - max_val)))
  y_loss = jnp.sum(bce * is_train) / (jnp.sum(is_train) + 1e-5)
  preds = jax.nn.sigmoid(y_h)
  loss = x_loss * impute_weight + y_loss * label_weight
  return loss, preds, imputations


# ----------------------------------------------------------------------------
# Deterministic parameter init (same shapes / init style as the PyTorch module)
# ----------------------------------------------------------------------------
def init_params(key, features_num, rnn_hid_size):
  F, H = features_num, rnn_hid_size
  ks = jax.random.split(key, 10)
  u = lambda k, shape, s: jax.random.uniform(k, shape, jnp.float32, -s, s)
  s_h = 1.0 / math.sqrt(H)
  return dict(
      td_W=u(ks[0], (H, F), s_h),
      td_b=u(ks[1], (H,), s_h),
      reg_W=u(ks[2], (F, H), s_h),
      reg_b=u(ks[3], (F,), s_h),
      lstm_W_ih=u(ks[4], (4 * H, 2 * F), s_h),
      lstm_W_hh=u(ks[5], (4 * H, H), s_h),
      lstm_b_ih=u(ks[6], (4 * H,), s_h),
      lstm_b_hh=u(ks[7], (4 * H,), s_h),
      out_W=u(ks[8], (1, H), s_h),
      out_b=u(ks[9], (1,), s_h),
  )


if __name__ == "__main__":
  # small shapes consistent with the module's forward
  B, T, F, H = 4, 8, 8, 32
  impute_weight, label_weight = 0.3, 1.0

  key = jax.random.PRNGKey(0)
  k_p, k_v, k_m, k_d, k_e, k_em, k_l, k_tr = jax.random.split(key, 8)

  params = init_params(k_p, F, H)

  values = jax.random.normal(k_v, (B, T, F), jnp.float32)
  masks = (jax.random.uniform(k_m, (B, T, F)) < 0.8).astype(jnp.float32)
  deltas = jax.random.uniform(k_d, (B, T, F), jnp.float32, 0.0, 5.0)
  evals = jax.random.normal(k_e, (B, T, F), jnp.float32)
  eval_masks = (jax.random.uniform(k_em, (B, T, F)) < 0.2).astype(jnp.float32)
  labels = (jax.random.uniform(k_l, (B, 1)) < 0.5).astype(jnp.float32)
  is_train = (jax.random.uniform(k_tr, (B, 1)) < 0.7).astype(jnp.float32)

  loss, preds, imputations = rits_forward_pallas(
      values, masks, deltas, labels, is_train, params,
      impute_weight, label_weight)
  jax.block_until_ready((loss, preds, imputations))

  # assemble the same return dict as the PyTorch module
  ret = {
      "loss": loss,
      "predictions": preds,
      "imputations": imputations,
      "labels": labels,
      "is_train": is_train,
      "evals": evals,
      "eval_masks": eval_masks,
  }

  # validate against a pure-JAX reference of the PyTorch forward
  loss_r, preds_r, imp_r = rits_forward_reference(
      values, masks, deltas, labels, is_train, params,
      impute_weight, label_weight)
  np.testing.assert_allclose(np.asarray(loss), np.asarray(loss_r),
                             rtol=1e-2, atol=1e-3)
  np.testing.assert_allclose(np.asarray(preds), np.asarray(preds_r),
                             rtol=1e-2, atol=1e-3)
  np.testing.assert_allclose(np.asarray(imputations), np.asarray(imp_r),
                             rtol=1e-2, atol=1e-3)

  print("KERNEL_OK")
</pallas_src>

<mosaic_0001>
module attributes {stable_mosaic.version = 11 : i64} {
  func.func @_rits_kernel(%arg0: memref<8x4x8xf32, #tpu.memory_space<vmem>>, %arg1: memref<8x4x8xf32, #tpu.memory_space<vmem>>, %arg2: memref<8x4x8xf32, #tpu.memory_space<vmem>>, %arg3: memref<4x1xf32, #tpu.memory_space<vmem>>, %arg4: memref<4x1xf32, #tpu.memory_space<vmem>>, %arg5: memref<8x32xf32, #tpu.memory_space<vmem>>, %arg6: memref<1x32xf32, #tpu.memory_space<vmem>>, %arg7: memref<32x8xf32, #tpu.memory_space<vmem>>, %arg8: memref<1x8xf32, #tpu.memory_space<vmem>>, %arg9: memref<8x128xf32, #tpu.memory_space<vmem>>, %arg10: memref<8x128xf32, #tpu.memory_space<vmem>>, %arg11: memref<32x128xf32, #tpu.memory_space<vmem>>, %arg12: memref<1x128xf32, #tpu.memory_space<vmem>>, %arg13: memref<32x1xf32, #tpu.memory_space<vmem>>, %arg14: memref<1x1xf32, #tpu.memory_space<vmem>>, %arg15: memref<8x4x8xf32, #tpu.memory_space<vmem>>, %arg16: memref<4x1xf32, #tpu.memory_space<vmem>>, %arg17: memref<1x1xf32, #tpu.memory_space<vmem>>, %arg18: memref<1x1xf32, #tpu.memory_space<vmem>>) attributes {dimension_semantics = [], scalar_prefetch = 0 : i64, scratch_operands = 0 : i64, tpu.core_type = #tpu.core_type<tc>} {
    %c0 = arith.constant 0 : index
    %c0_0 = arith.constant 0 : index
    %0 = vector.load %arg5[%c0, %c0_0] : memref<8x32xf32, #tpu.memory_space<vmem>>, vector<8x32xf32>
    %c0_1 = arith.constant 0 : index
    %c0_2 = arith.constant 0 : index
    %1 = vector.load %arg6[%c0_1, %c0_2] : memref<1x32xf32, #tpu.memory_space<vmem>>, vector<1x32xf32>
    %c0_3 = arith.constant 0 : index
    %c0_4 = arith.constant 0 : index
    %2 = vector.load %arg7[%c0_3, %c0_4] : memref<32x8xf32, #tpu.memory_space<vmem>>, vector<32x8xf32>
    %c0_5 = arith.constant 0 : index
    %c0_6 = arith.constant 0 : index
    %3 = vector.load %arg8[%c0_5, %c0_6] : memref<1x8xf32, #tpu.memory_space<vmem>>, vector<1x8xf32>
    %c0_7 = arith.constant 0 : index
    %c0_8 = arith.constant 0 : index
    %4 = vector.load %arg9[%c0_7, %c0_8] : memref<8x128xf32, #tpu.memory_space<vmem>>, vector<8x128xf32>
    %c0_9 = arith.constant 0 : index
    %c0_10 = arith.constant 0 : index
    %5 = vector.load %arg10[%c0_9, %c0_10] : memref<8x128xf32, #tpu.memory_space<vmem>>, vector<8x128xf32>
    %c0_11 = arith.constant 0 : index
    %c0_12 = arith.constant 0 : index
    %6 = vector.load %arg11[%c0_11, %c0_12] : memref<32x128xf32, #tpu.memory_space<vmem>>, vector<32x128xf32>
    %c0_13 = arith.constant 0 : index
    %c0_14 = arith.constant 0 : index
    %7 = vector.load %arg12[%c0_13, %c0_14] : memref<1x128xf32, #tpu.memory_space<vmem>>, vector<1x128xf32>
    %cst = arith.constant 0.000000e+00 : f32
    %8 = vector.broadcast %cst : f32 to vector<4x32xf32>
    %cst_15 = arith.constant 0.000000e+00 : f32
    %9 = vector.broadcast %cst_15 : f32 to vector<4x32xf32>
    %cst_16 = arith.constant 0.000000e+00 : f32
    %10 = vector.broadcast %cst_16 : f32 to vector<1x1xf32>
    %c0_i32 = arith.constant 0 : i32
    %11 = arith.index_cast %c0_i32 : i32 to index
    %c0_17 = arith.constant 0 : index
    %c0_18 = arith.constant 0 : index
    %12 = vector.load %arg0[%11, %c0_17, %c0_18] : memref<8x4x8xf32, #tpu.memory_space<vmem>>, vector<1x4x8xf32>
    %13 = vector.shape_cast %12 : vector<1x4x8xf32> to vector<4x8xf32>
    %14 = arith.index_cast %c0_i32 : i32 to index
    %c0_19 = arith.constant 0 : index
    %c0_20 = arith.constant 0 : index
    %15 = vector.load %arg1[%14, %c0_19, %c0_20] : memref<8x4x8xf32, #tpu.memory_space<vmem>>, vector<1x4x8xf32>
    %16 = vector.shape_cast %15 : vector<1x4x8xf32> to vector<4x8xf32>
    %17 = arith.index_cast %c0_i32 : i32 to index
    %c0_21 = arith.constant 0 : index
    %c0_22 = arith.constant 0 : index
    %18 = vector.load %arg2[%17, %c0_21, %c0_22] : memref<8x4x8xf32, #tpu.memory_space<vmem>>, vector<1x4x8xf32>
    %19 = vector.shape_cast %18 : vector<1x4x8xf32> to vector<4x8xf32>
    %cst_23 = arith.constant dense<0.000000e+00> : vector<4x32xf32>
    %20 = tpu.matmul %19, %0, %cst_23 {dimension_numbers = #tpu.dot_dimension_numbers<[1], [0], [0], [1], [0, 0, 1, 1], [], []>} : vector<4x8xf32>, vector<8x32xf32>, vector<4x32xf32> -> vector<4x32xf32>
    %21 = vector.broadcast %1 : vector<1x32xf32> to vector<4x32xf32>
    %22 = arith.addf %20, %21 : vector<4x32xf32>
    %cst_24 = arith.constant 0.000000e+00 : f32
    %23 = vector.broadcast %cst_24 : f32 to vector<4x32xf32>
    %24 = arith.maximumf %22, %23 : vector<4x32xf32>
    %cst_25 = arith.constant 0.000000e+00 : f32
    %25 = vector.broadcast %cst_25 : f32 to vector<4x32xf32>
    %26 = arith.subf %25, %24 : vector<4x32xf32>
    %27 = math.exp %26 : vector<4x32xf32>
    %28 = arith.mulf %8, %27 : vector<4x32xf32>
    %cst_26 = arith.constant dense<0.000000e+00> : vector<4x8xf32>
    %29 = tpu.matmul %28, %2, %cst_26 {dimension_numbers = #tpu.dot_dimension_numbers<[1], [0], [0], [1], [0, 0, 1, 1], [], []>} : vector<4x32xf32>, vector<32x8xf32>, vector<4x8xf32> -> vector<4x8xf32>
    %30 = vector.broadcast %3 : vector<1x8xf32> to vector<4x8xf32>
    %31 = arith.addf %29, %30 : vector<4x8xf32>
    %32 = arith.mulf %16, %13 : vector<4x8xf32>
    %cst_27 = arith.constant 1.000000e+00 : f32
    %33 = vector.broadcast %cst_27 : f32 to vector<4x8xf32>
    %34 = arith.subf %33, %16 : vector<4x8xf32>
    %35 = arith.mulf %34, %31 : vector<4x8xf32>
    %36 = arith.addf %32, %35 : vector<4x8xf32>
    %37 = arith.subf %13, %31 : vector<4x8xf32>
    %38 = math.absf %37 : vector<4x8xf32>
    %39 = arith.mulf %38, %16 : vector<4x8xf32>
    %40 = vector.shape_cast %39 : vector<4x8xf32> to vector<1x4x8xf32>
    %cst_28 = arith.constant dense<0.000000e+00> : vector<1xf32>
    %41 = vector.multi_reduction <add>, %40, %cst_28 [1, 2] : vector<1x4x8xf32> to vector<1xf32>
    %42 = vector.shape_cast %41 : vector<1xf32> to vector<1x1x1xf32>
    %43 = vector.extract %42[0, 0, 0] : f32 from vector<1x1x1xf32>
    %44 = vector.broadcast %43 : f32 to vector<1x1xf32>
    %45 = vector.shape_cast %16 : vector<4x8xf32> to vector<1x4x8xf32>
    %cst_29 = arith.constant dense<0.000000e+00> : vector<1xf32>
    %46 = vector.multi_reduction <add>, %45, %cst_29 [1, 2] : vector<1x4x8xf32> to vector<1xf32>
    %47 = vector.shape_cast %46 : vector<1xf32> to vector<1x1x1xf32>
    %48 = vector.extract %47[0, 0, 0] : f32 from vector<1x1x1xf32>
    %49 = vector.broadcast %48 : f32 to vector<1x1xf32>
    %cst_30 = arith.constant 9.99999974E-6 : f32
    %50 = vector.broadcast %cst_30 : f32 to vector<1x1xf32>
    %51 = arith.addf %49, %50 : vector<1x1xf32>
    %52 = tpu.reciprocal %51 {approx = true} : vector<1x1xf32> -> vector<1x1xf32>
    %53 = arith.mulf %44, %52 : vector<1x1xf32>
    %54 = arith.addf %10, %53 : vector<1x1xf32>
    %cst_31 = arith.constant dense<0.000000e+00> : vector<4x128xf32>
    %55 = tpu.matmul %36, %4, %cst_31 {dimension_numbers = #tpu.dot_dimension_numbers<[1], [0], [0], [1], [0, 0, 1, 1], [], []>} : vector<4x8xf32>, vector<8x128xf32>, vector<4x128xf32> -> vector<4x128xf32>
    %cst_32 = arith.constant dense<0.000000e+00> : vector<4x128xf32>
    %56 = tpu.matmul %16, %5, %cst_32 {dimension_numbers = #tpu.dot_dimension_numbers<[1], [0], [0], [1], [0, 0, 1, 1], [], []>} : vector<4x8xf32>, vector<8x128xf32>, vector<4x128xf32> -> vector<4x128xf32>
    %57 = arith.addf %55, %56 : vector<4x128xf32>
    %cst_33 = arith.constant dense<0.000000e+00> : vector<4x128xf32>
    %58 = tpu.matmul %28, %6, %cst_33 {dimension_numbers = #tpu.dot_dimension_numbers<[1], [0], [0], [1], [0, 0, 1, 1], [], []>} : vector<4x32xf32>, vector<32x128xf32>, vector<4x128xf32> -> vector<4x128xf32>
    %59 = arith.addf %57, %58 : vector<4x128xf32>
    %60 = vector.broadcast %7 : vector<1x128xf32> to vector<4x128xf32>
    %61 = arith.addf %59, %60 : vector<4x128xf32>
    %62 = vector.extract_strided_slice %61 {offsets = [0, 0], sizes = [4, 32], strides = [1, 1]} : vector<4x128xf32> to vector<4x32xf32>
    %63 = arith.negf %62 : vector<4x32xf32>
    %64 = math.exp %63 : vector<4x32xf32>
    %cst_34 = arith.constant 1.000000e+00 : f32
    %65 = vector.broadcast %cst_34 : f32 to vector<4x32xf32>
    %66 = arith.addf %65, %64 : vector<4x32xf32>
    %67 = arith.divf %65, %66 : vector<4x32xf32>
    %68 = vector.extract_strided_slice %61 {offsets = [0, 32], sizes = [4, 32], strides = [1, 1]} : vector<4x128xf32> to vector<4x32xf32>
    %69 = arith.negf %68 : vector<4x32xf32>
    %70 = math.exp %69 : vector<4x32xf32>
    %cst_35 = arith.constant 1.000000e+00 : f32
    %71 = vector.broadcast %cst_35 : f32 to vector<4x32xf32>
    %72 = arith.addf %71, %70 : vector<4x32xf32>
    %73 = arith.divf %71, %72 : vector<4x32xf32>
    %74 = vector.extract_strided_slice %61 {offsets = [0, 64], sizes = [4, 32], strides = [1, 1]} : vector<4x128xf32> to vector<4x32xf32>
    %75 = math.tanh %74 : vector<4x32xf32>
    %76 = vector.extract_strided_slice %61 {offsets = [0, 96], sizes = [4, 32], strides = [1, 1]} : vector<4x128xf32> to vector<4x32xf32>
    %77 = arith.negf %76 : vector<4x32xf32>
    %78 = math.exp %77 : vector<4x32xf32>
    %cst_36 = arith.constant 1.000000e+00 : f32
    %79 = vector.broadcast %cst_36 : f32 to vector<4x32xf32>
    %80 = arith.addf %79, %78 : vector<4x32xf32>
    %81 = arith.divf %79, %80 : vector<4x32xf32>
    %82 = arith.mulf %73, %9 : vector<4x32xf32>
    %83 = arith.mulf %67, %75 : vector<4x32xf32>
    %84 = arith.addf %82, %83 : vector<4x32xf32>
    %85 = math.tanh %84 : vector<4x32xf32>
    %86 = arith.mulf %81, %85 : vector<4x32xf32>
    %87 = arith.index_cast %c0_i32 : i32 to index
    %c0_37 = arith.constant 0 : index
    %c0_38 = arith.constant 0 : index
    %88 = vector.load %arg15[%87, %c0_37, %c0_38] : memref<8x4x8xf32, #tpu.memory_space<vmem>>, vector<1x4x8xf32>
    %89 = vector.shape_cast %88 : vector<1x4x8xf32> to vector<4x8xf32>
    %90 = vector.shape_cast %36 : vector<4x8xf32> to vector<1x4x8xf32>
    tpu.vector_store %arg15[%87, %c0_37, %c0_38], %90 {strides = array<i32>} : memref<8x4x8xf32, #tpu.memory_space<vmem>>, vector<1x4x8xf32>,
    %c1_i32 = arith.constant 1 : i32
    %91 = arith.index_cast %c1_i32 : i32 to index
    %c0_39 = arith.constant 0 : index
    %c0_40 = arith.constant 0 : index
    %92 = vector.load %arg0[%91, %c0_39, %c0_40] : memref<8x4x8xf32, #tpu.memory_space<vmem>>, vector<1x4x8xf32>
    %93 = vector.shape_cast %92 : vector<1x4x8xf32> to vector<4x8xf32>
    %94 = arith.index_cast %c1_i32 : i32 to index
    %c0_41 = arith.constant 0 : index
    %c0_42 = arith.constant 0 : index
    %95 = vector.load %arg1[%94, %c0_41, %c0_42] : memref<8x4x8xf32, #tpu.memory_space<vmem>>, vector<1x4x8xf32>
    %96 = vector.shape_cast %95 : vector<1x4x8xf32> to vector<4x8xf32>
    %97 = arith.index_cast %c1_i32 : i32 to index
    %c0_43 = arith.constant 0 : index
    %c0_44 = arith.constant 0 : index
    %98 = vector.load %arg2[%97, %c0_43, %c0_44] : memref<8x4x8xf32, #tpu.memory_space<vmem>>, vector<1x4x8xf32>
    %99 = vector.shape_cast %98 : vector<1x4x8xf32> to vector<4x8xf32>
    %cst_45 = arith.constant dense<0.000000e+00> : vector<4x32xf32>
    %100 = tpu.matmul %99, %0, %cst_45 {dimension_numbers = #tpu.dot_dimension_numbers<[1], [0], [0], [1], [0, 0, 1, 1], [], []>} : vector<4x8xf32>, vector<8x32xf32>, vector<4x32xf32> -> vector<4x32xf32>
    %101 = vector.broadcast %1 : vector<1x32xf32> to vector<4x32xf32>
    %102 = arith.addf %100, %101 : vector<4x32xf32>
    %cst_46 = arith.constant 0.000000e+00 : f32
    %103 = vector.broadcast %cst_46 : f32 to vector<4x32xf32>
    %104 = arith.maximumf %102, %103 : vector<4x32xf32>
    %cst_47 = arith.constant 0.000000e+00 : f32
    %105 = vector.broadcast %cst_47 : f32 to vector<4x32xf32>
    %106 = arith.subf %105, %104 : vector<4x32xf32>
    %107 = math.exp %106 : vector<4x32xf32>
    %108 = arith.mulf %86, %107 : vector<4x32xf32>
    %cst_48 = arith.constant dense<0.000000e+00> : vector<4x8xf32>
    %109 = tpu.matmul %108, %2, %cst_48 {dimension_numbers = #tpu.dot_dimension_numbers<[1], [0], [0], [1], [0, 0, 1, 1], [], []>} : vector<4x32xf32>, vector<32x8xf32>, vector<4x8xf32> -> vector<4x8xf32>
    %110 = vector.broadcast %3 : vector<1x8xf32> to vector<4x8xf32>
    %111 = arith.addf %109, %110 : vector<4x8xf32>
    %112 = arith.mulf %96, %93 : vector<4x8xf32>
    %cst_49 = arith.constant 1.000000e+00 : f32
    %113 = vector.broadcast %cst_49 : f32 to vector<4x8xf32>
    %114 = arith.subf %113, %96 : vector<4x8xf32>
    %115 = arith.mulf %114, %111 : vector<4x8xf32>
    %116 = arith.addf %112, %115 : vector<4x8xf32>
    %117 = arith.subf %93, %111 : vector<4x8xf32>
    %118 = math.absf %117 : vector<4x8xf32>
    %119 = arith.mulf %118, %96 : vector<4x8xf32>
    %120 = vector.shape_cast %119 : vector<4x8xf32> to vector<1x4x8xf32>
    %cst_50 = arith.constant dense<0.000000e+00> : vector<1xf32>
    %121 = vector.multi_reduction <add>, %120, %cst_50 [1, 2] : vector<1x4x8xf32> to vector<1xf32>
    %122 = vector.shape_cast %121 : vector<1xf32> to vector<1x1x1xf32>
    %123 = vector.extract %122[0, 0, 0] : f32 from vector<1x1x1xf32>
    %124 = vector.broadcast %123 : f32 to vector<1x1xf32>
    %125 = vector.shape_cast %96 : vector<4x8xf32> to vector<1x4x8xf32>
    %cst_51 = arith.constant dense<0.000000e+00> : vector<1xf32>
    %126 = vector.multi_reduction <add>, %125, %cst_51 [1, 2] : vector<1x4x8xf32> to vector<1xf32>
    %127 = vector.shape_cast %126 : vector<1xf32> to vector<1x1x1xf32>
    %128 = vector.extract %127[0, 0, 0] : f32 from vector<1x1x1xf32>
    %129 = vector.broadcast %128 : f32 to vector<1x1xf32>
    %cst_52 = arith.constant 9.99999974E-6 : f32
    %130 = vector.broadcast %cst_52 : f32 to vector<1x1xf32>
    %131 = arith.addf %129, %130 : vector<1x1xf32>
    %132 = tpu.reciprocal %131 {approx = true} : vector<1x1xf32> -> vector<1x1xf32>
    %133 = arith.mulf %124, %132 : vector<1x1xf32>
    %134 = arith.addf %54, %133 : vector<1x1xf32>
    %cst_53 = arith.constant dense<0.000000e+00> : vector<4x128xf32>
    %135 = tpu.matmul %116, %4, %cst_53 {dimension_numbers = #tpu.dot_dimension_numbers<[1], [0], [0], [1], [0, 0, 1, 1], [], []>} : vector<4x8xf32>, vector<8x128xf32>, vector<4x128xf32> -> vector<4x128xf32>
    %cst_54 = arith.constant dense<0.000000e+00> : vector<4x128xf32>
    %136 = tpu.matmul %96, %5, %cst_54 {dimension_numbers = #tpu.dot_dimension_numbers<[1], [0], [0], [1], [0, 0, 1, 1], [], []>} : vector<4x8xf32>, vector<8x128xf32>, vector<4x128xf32> -> vector<4x128xf32>
    %137 = arith.addf %135, %136 : vector<4x128xf32>
    %cst_55 = arith.constant dense<0.000000e+00> : vector<4x128xf32>
    %138 = tpu.matmul %108, %6, %cst_55 {dimension_numbers = #tpu.dot_dimension_numbers<[1], [0], [0], [1], [0, 0, 1, 1], [], []>} : vector<4x32xf32>, vector<32x128xf32>, vector<4x128xf32> -> vector<4x128xf32>
    %139 = arith.addf %137, %138 : vector<4x128xf32>
    %140 = vector.broadcast %7 : vector<1x128xf32> to vector<4x128xf32>
    %141 = arith.addf %139, %140 : vector<4x128xf32>
    %142 = vector.extract_strided_slice %141 {offsets = [0, 0], sizes = [4, 32], strides = [1, 1]} : vector<4x128xf32> to vector<4x32xf32>
    %143 = arith.negf %142 : vector<4x32xf32>
    %144 = math.exp %143 : vector<4x32xf32>
    %cst_56 = arith.constant 1.000000e+00 : f32
    %145 = vector.broadcast %cst_56 : f32 to vector<4x32xf32>
    %146 = arith.addf %145, %144 : vector<4x32xf32>
    %147 = arith.divf %145, %146 : vector<4x32xf32>
    %148 = vector.extract_strided_slice %141 {offsets = [0, 32], sizes = [4, 32], strides = [1, 1]} : vector<4x128xf32> to vector<4x32xf32>
    %149 = arith.negf %148 : vector<4x32xf32>
    %150 = math.exp %149 : vector<4x32xf32>
    %cst_57 = arith.constant 1.000000e+00 : f32
    %151 = vector.broadcast %cst_57 : f32 to vector<4x32xf32>
    %152 = arith.addf %151, %150 : vector<4x32xf32>
    %153 = arith.divf %151, %152 : vector<4x32xf32>
    %154 = vector.extract_strided_slice %141 {offsets = [0, 64], sizes = [4, 32], strides = [1, 1]} : vector<4x128xf32> to vector<4x32xf32>
    %155 = math.tanh %154 : vector<4x32xf32>
    %156 = vector.extract_strided_slice %141 {offsets = [0, 96], sizes = [4, 32], strides = [1, 1]} : vector<4x128xf32> to vector<4x32xf32>
    %157 = arith.negf %156 : vector<4x32xf32>
    %158 = math.exp %157 : vector<4x32xf32>
    %cst_58 = arith.constant 1.000000e+00 : f32
    %159 = vector.broadcast %cst_58 : f32 to vector<4x32xf32>
    %160 = arith.addf %159, %158 : vector<4x32xf32>
    %161 = arith.divf %159, %160 : vector<4x32xf32>
    %162 = arith.mulf %153, %84 : vector<4x32xf32>
    %163 = arith.mulf %147, %155 : vector<4x32xf32>
    %164 = arith.addf %162, %163 : vector<4x32xf32>
    %165 = math.tanh %164 : vector<4x32xf32>
    %166 = arith.mulf %161, %165 : vector<4x32xf32>
    %167 = arith.index_cast %c1_i32 : i32 to index
    %c0_59 = arith.constant 0 : index
    %c0_60 = arith.constant 0 : index
    %168 = vector.load %arg15[%167, %c0_59, %c0_60] : memref<8x4x8xf32, #tpu.memory_space<vmem>>, vector<1x4x8xf32>
    %169 = vector.shape_cast %168 : vector<1x4x8xf32> to vector<4x8xf32>
    %170 = vector.shape_cast %116 : vector<4x8xf32> to vector<1x4x8xf32>
    tpu.vector_store %arg15[%167, %c0_59, %c0_60], %170 {strides = array<i32>} : memref<8x4x8xf32, #tpu.memory_space<vmem>>, vector<1x4x8xf32>,
    %c2_i32 = arith.constant 2 : i32
    %171 = arith.index_cast %c2_i32 : i32 to index
    %c0_61 = arith.constant 0 : index
    %c0_62 = arith.constant 0 : index
    %172 = vector.load %arg0[%171, %c0_61, %c0_62] : memref<8x4x8xf32, #tpu.memory_space<vmem>>, vector<1x4x8xf32>
    %173 = vector.shape_cast %172 : vector<1x4x8xf32> to vector<4x8xf32>
    %174 = arith.index_cast %c2_i32 : i32 to index
    %c0_63 = arith.constant 0 : index
    %c0_64 = arith.constant 0 : index
    %175 = vector.load %arg1[%174, %c0_63, %c0_64] : memref<8x4x8xf32, #tpu.memory_space<vmem>>, vector<1x4x8xf32>
    %176 = vector.shape_cast %175 : vector<1x4x8xf32> to vector<4x8xf32>
    %177 = arith.index_cast %c2_i32 : i32 to index
    %c0_65 = arith.constant 0 : index
    %c0_66 = arith.constant 0 : index
    %178 = vector.load %arg2[%177, %c0_65, %c0_66] : memref<8x4x8xf32, #tpu.memory_space<vmem>>, vector<1x4x8xf32>
    %179 = vector.shape_cast %178 : vector<1x4x8xf32> to vector<4x8xf32>
    %cst_67 = arith.constant dense<0.000000e+00> : vector<4x32xf32>
    %180 = tpu.matmul %179, %0, %cst_67 {dimension_numbers = #tpu.dot_dimension_numbers<[1], [0], [0], [1], [0, 0, 1, 1], [], []>} : vector<4x8xf32>, vector<8x32xf32>, vector<4x32xf32> -> vector<4x32xf32>
    %181 = vector.broadcast %1 : vector<1x32xf32> to vector<4x32xf32>
    %182 = arith.addf %180, %181 : vector<4x32xf32>
    %cst_68 = arith.constant 0.000000e+00 : f32
    %183 = vector.broadcast %cst_68 : f32 to vector<4x32xf32>
    %184 = arith.maximumf %182, %183 : vector<4x32xf32>
    %cst_69 = arith.constant 0.000000e+00 : f32
    %185 = vector.broadcast %cst_69 : f32 to vector<4x32xf32>
    %186 = arith.subf %185, %184 : vector<4x32xf32>
    %187 = math.exp %186 : vector<4x32xf32>
    %188 = arith.mulf %166, %187 : vector<4x32xf32>
    %cst_70 = arith.constant dense<0.000000e+00> : vector<4x8xf32>
    %189 = tpu.matmul %188, %2, %cst_70 {dimension_numbers = #tpu.dot_dimension_numbers<[1], [0], [0], [1], [0, 0, 1, 1], [], []>} : vector<4x32xf32>, vector<32x8xf32>, vector<4x8xf32> -> vector<4x8xf32>
    %190 = vector.broadcast %3 : vector<1x8xf32> to vector<4x8xf32>
    %191 = arith.addf %189, %190 : vector<4x8xf32>
    %192 = arith.mulf %176, %173 : vector<4x8xf32>
    %cst_71 = arith.constant 1.000000e+00 : f32
    %193 = vector.broadcast %cst_71 : f32 to vector<4x8xf32>
    %194 = arith.subf %193, %176 : vector<4x8xf32>
    %195 = arith.mulf %194, %191 : vector<4x8xf32>
    %196 = arith.addf %192, %195 : vector<4x8xf32>
    %197 = arith.subf %173, %191 : vector<4x8xf32>
    %198 = math.absf %197 : vector<4x8xf32>
    %199 = arith.mulf %198, %176 : vector<4x8xf32>
    %200 = vector.shape_cast %199 : vector<4x8xf32> to vector<1x4x8xf32>
    %cst_72 = arith.constant dense<0.000000e+00> : vector<1xf32>
    %201 = vector.multi_reduction <add>, %200, %cst_72 [1, 2] : vector<1x4x8xf32> to vector<1xf32>
    %202 = vector.shape_cast %201 : vector<1xf32> to vector<1x1x1xf32>
    %203 = vector.extract %202[0, 0, 0] : f32 from vector<1x1x1xf32>
    %204 = vector.broadcast %203 : f32 to vector<1x1xf32>
    %205 = vector.shape_cast %176 : vector<4x8xf32> to vector<1x4x8xf32>
    %cst_73 = arith.constant dense<0.000000e+00> : vector<1xf32>
    %206 = vector.multi_reduction <add>, %205, %cst_73 [1, 2] : vector<1x4x8xf32> to vector<1xf32>
    %207 = vector.shape_cast %206 : vector<1xf32> to vector<1x1x1xf32>
    %208 = vector.extract %207[0, 0, 0] : f32 from vector<1x1x1xf32>
    %209 = vector.broadcast %208 : f32 to vector<1x1xf32>
    %cst_74 = arith.constant 9.99999974E-6 : f32
    %210 = vector.broadcast %cst_74 : f32 to vector<1x1xf32>
    %211 = arith.addf %209, %210 : vector<1x1xf32>
    %212 = tpu.reciprocal %211 {approx = true} : vector<1x1xf32> -> vector<1x1xf32>
    %213 = arith.mulf %204, %212 : vector<1x1xf32>
    %214 = arith.addf %134, %213 : vector<1x1xf32>
    %cst_75 = arith.constant dense<0.000000e+00> : vector<4x128xf32>
    %215 = tpu.matmul %196, %4, %cst_75 {dimension_numbers = #tpu.dot_dimension_numbers<[1], [0], [0], [1], [0, 0, 1, 1], [], []>} : vector<4x8xf32>, vector<8x128xf32>, vector<4x128xf32> -> vector<4x128xf32>
    %cst_76 = arith.constant dense<0.000000e+00> : vector<4x128xf32>
    %216 = tpu.matmul %176, %5, %cst_76 {dimension_numbers = #tpu.dot_dimension_numbers<[1], [0], [0], [1], [0, 0, 1, 1], [], []>} : vector<4x8xf32>, vector<8x128xf32>, vector<4x128xf32> -> vector<4x128xf32>
    %217 = arith.addf %215, %216 : vector<4x128xf32>
    %cst_77 = arith.constant dense<0.000000e+00> : vector<4x128xf32>
    %218 = tpu.matmul %188, %6, %cst_77 {dimension_numbers = #tpu.dot_dimension_numbers<[1], [0], [0], [1], [0, 0, 1, 1], [], []>} : vector<4x32xf32>, vector<32x128xf32>, vector<4x128xf32> -> vector<4x128xf32>
    %219 = arith.addf %217, %218 : vector<4x128xf32>
    %220 = vector.broadcast %7 : vector<1x128xf32> to vector<4x128xf32>
    %221 = arith.addf %219, %220 : vector<4x128xf32>
    %222 = vector.extract_strided_slice %221 {offsets = [0, 0], sizes = [4, 32], strides = [1, 1]} : vector<4x128xf32> to vector<4x32xf32>
    %223 = arith.negf %222 : vector<4x32xf32>
    %224 = math.exp %223 : vector<4x32xf32>
    %cst_78 = arith.constant 1.000000e+00 : f32
    %225 = vector.broadcast %cst_78 : f32 to vector<4x32xf32>
    %226 = arith.addf %225, %224 : vector<4x32xf32>
    %227 = arith.divf %225, %226 : vector<4x32xf32>
    %228 = vector.extract_strided_slice %221 {offsets = [0, 32], sizes = [4, 32], strides = [1, 1]} : vector<4x128xf32> to vector<4x32xf32>
    %229 = arith.negf %228 : vector<4x32xf32>
    %230 = math.exp %229 : vector<4x32xf32>
    %cst_79 = arith.constant 1.000000e+00 : f32
    %231 = vector.broadcast %cst_79 : f32 to vector<4x32xf32>
    %232 = arith.addf %231, %230 : vector<4x32xf32>
    %233 = arith.divf %231, %232 : vector<4x32xf32>
    %234 = vector.extract_strided_slice %221 {offsets = [0, 64], sizes = [4, 32], strides = [1, 1]} : vector<4x128xf32> to vector<4x32xf32>
    %235 = math.tanh %234 : vector<4x32xf32>
    %236 = vector.extract_strided_slice %221 {offsets = [0, 96], sizes = [4, 32], strides = [1, 1]} : vector<4x128xf32> to vector<4x32xf32>
    %237 = arith.negf %236 : vector<4x32xf32>
    %238 = math.exp %237 : vector<4x32xf32>
    %cst_80 = arith.constant 1.000000e+00 : f32
    %239 = vector.broadcast %cst_80 : f32 to vector<4x32xf32>
    %240 = arith.addf %239, %238 : vector<4x32xf32>
    %241 = arith.divf %239, %240 : vector<4x32xf32>
    %242 = arith.mulf %233, %164 : vector<4x32xf32>
    %243 = arith.mulf %227, %235 : vector<4x32xf32>
    %244 = arith.addf %242, %243 : vector<4x32xf32>
    %245 = math.tanh %244 : vector<4x32xf32>
    %246 = arith.mulf %241, %245 : vector<4x32xf32>
    %247 = arith.index_cast %c2_i32 : i32 to index
    %c0_81 = arith.constant 0 : index
    %c0_82 = arith.constant 0 : index
    %248 = vector.load %arg15[%247, %c0_81, %c0_82] : memref<8x4x8xf32, #tpu.memory_space<vmem>>, vector<1x4x8xf32>
    %249 = vector.shape_cast %248 : vector<1x4x8xf32> to vector<4x8xf32>
    %250 = vector.shape_cast %196 : vector<4x8xf32> to vector<1x4x8xf32>
    tpu.vector_store %arg15[%247, %c0_81, %c0_82], %250 {strides = array<i32>} : memref<8x4x8xf32, #tpu.memory_space<vmem>>, vector<1x4x8xf32>,
    %c3_i32 = arith.constant 3 : i32
    %251 = arith.index_cast %c3_i32 : i32 to index
    %c0_83 = arith.constant 0 : index
    %c0_84 = arith.constant 0 : index
    %252 = vector.load %arg0[%251, %c0_83, %c0_84] : memref<8x4x8xf32, #tpu.memory_space<vmem>>, vector<1x4x8xf32>
    %253 = vector.shape_cast %252 : vector<1x4x8xf32> to vector<4x8xf32>
    %254 = arith.index_cast %c3_i32 : i32 to index
    %c0_85 = arith.constant 0 : index
    %c0_86 = arith.constant 0 : index
    %255 = vector.load %arg1[%254, %c0_85, %c0_86] : memref<8x4x8xf32, #tpu.memory_space<vmem>>, vector<1x4x8xf32>
    %256 = vector.shape_cast %255 : vector<1x4x8xf32> to vector<4x8xf32>
    %257 = arith.index_cast %c3_i32 : i32 to index
    %c0_87 = arith.constant 0 : index
    %c0_88 = arith.constant 0 : index
    %258 = vector.load %arg2[%257, %c0_87, %c0_88] : memref<8x4x8xf32, #tpu.memory_space<vmem>>, vector<1x4x8xf32>
    %259 = vector.shape_cast %258 : vector<1x4x8xf32> to vector<4x8xf32>
    %cst_89 = arith.constant dense<0.000000e+00> : vector<4x32xf32>
    %260 = tpu.matmul %259, %0, %cst_89 {dimension_numbers = #tpu.dot_dimension_numbers<[1], [0], [0], [1], [0, 0, 1, 1], [], []>} : vector<4x8xf32>, vector<8x32xf32>, vector<4x32xf32> -> vector<4x32xf32>
    %261 = vector.broadcast %1 : vector<1x32xf32> to vector<4x32xf32>
    %262 = arith.addf %260, %261 : vector<4x32xf32>
    %cst_90 = arith.constant 0.000000e+00 : f32
    %263 = vector.broadcast %cst_90 : f32 to vector<4x32xf32>
    %264 = arith.maximumf %262, %263 : vector<4x32xf32>
    %cst_91 = arith.constant 0.000000e+00 : f32
    %265 = vector.broadcast %cst_91 : f32 to vector<4x32xf32>
    %266 = arith.subf %265, %264 : vector<4x32xf32>
    %267 = math.exp %266 : vector<4x32xf32>
    %268 = arith.mulf %246, %267 : vector<4x32xf32>
    %cst_92 = arith.constant dense<0.000000e+00> : vector<4x8xf32>
    %269 = tpu.matmul %268, %2, %cst_92 {dimension_numbers = #tpu.dot_dimension_numbers<[1], [0], [0], [1], [0, 0, 1, 1], [], []>} : vector<4x32xf32>, vector<32x8xf32>, vector<4x8xf32> -> vector<4x8xf32>
    %270 = vector.broadcast %3 : vector<1x8xf32> to vector<4x8xf32>
    %271 = arith.addf %269, %270 : vector<4x8xf32>
    %272 = arith.mulf %256, %253 : vector<4x8xf32>
    %cst_93 = arith.constant 1.000000e+00 : f32
    %273 = vector.broadcast %cst_93 : f32 to vector<4x8xf32>
    %274 = arith.subf %273, %256 : vector<4x8xf32>
    %275 = arith.mulf %274, %271 : vector<4x8xf32>
    %276 = arith.addf %272, %275 : vector<4x8xf32>
    %277 = arith.subf %253, %271 : vector<4x8xf32>
    %278 = math.absf %277 : vector<4x8xf32>
    %279 = arith.mulf %278, %256 : vector<4x8xf32>
    %280 = vector.shape_cast %279 : vector<4x8xf32> to vector<1x4x8xf32>
    %cst_94 = arith.constant dense<0.000000e+00> : vector<1xf32>
    %281 = vector.multi_reduction <add>, %280, %cst_94 [1, 2] : vector<1x4x8xf32> to vector<1xf32>
    %282 = vector.shape_cast %281 : vector<1xf32> to vector<1x1x1xf32>
    %283 = vector.extract %282[0, 0, 0] : f32 from vector<1x1x1xf32>
    %284 = vector.broadcast %283 : f32 to vector<1x1xf32>
    %285 = vector.shape_cast %256 : vector<4x8xf32> to vector<1x4x8xf32>
    %cst_95 = arith.constant dense<0.000000e+00> : vector<1xf32>
    %286 = vector.multi_reduction <add>, %285, %cst_95 [1, 2] : vector<1x4x8xf32> to vector<1xf32>
    %287 = vector.shape_cast %286 : vector<1xf32> to vector<1x1x1xf32>
    %288 = vector.extract %287[0, 0, 0] : f32 from vector<1x1x1xf32>
    %289 = vector.broadcast %288 : f32 to vector<1x1xf32>
    %cst_96 = arith.constant 9.99999974E-6 : f32
    %290 = vector.broadcast %cst_96 : f32 to vector<1x1xf32>
    %291 = arith.addf %289, %290 : vector<1x1xf32>
    %292 = tpu.reciprocal %291 {approx = true} : vector<1x1xf32> -> vector<1x1xf32>
    %293 = arith.mulf %284, %292 : vector<1x1xf32>
    %294 = arith.addf %214, %293 : vector<1x1xf32>
    %cst_97 = arith.constant dense<0.000000e+00> : vector<4x128xf32>
    %295 = tpu.matmul %276, %4, %cst_97 {dimension_numbers = #tpu.dot_dimension_numbers<[1], [0], [0], [1], [0, 0, 1, 1], [], []>} : vector<4x8xf32>, vector<8x128xf32>, vector<4x128xf32> -> vector<4x128xf32>
    %cst_98 = arith.constant dense<0.000000e+00> : vector<4x128xf32>
    %296 = tpu.matmul %256, %5, %cst_98 {dimension_numbers = #tpu.dot_dimension_numbers<[1], [0], [0], [1], [0, 0, 1, 1], [], []>} : vector<4x8xf32>, vector<8x128xf32>, vector<4x128xf32> -> vector<4x128xf32>
    %297 = arith.addf %295, %296 : vector<4x128xf32>
    %cst_99 = arith.constant dense<0.000000e+00> : vector<4x128xf32>
    %298 = tpu.matmul %268, %6, %cst_99 {dimension_numbers = #tpu.dot_dimension_numbers<[1], [0], [0], [1], [0, 0, 1, 1], [], []>} : vector<4x32xf32>, vector<32x128xf32>, vector<4x128xf32> -> vector<4x128xf32>
    %299 = arith.addf %297, %298 : vector<4x128xf32>
    %300 = vector.broadcast %7 : vector<1x128xf32> to vector<4x128xf32>
    %301 = arith.addf %299, %300 : vector<4x128xf32>
    %302 = vector.extract_strided_slice %301 {offsets = [0, 0], sizes = [4, 32], strides = [1, 1]} : vector<4x128xf32> to vector<4x32xf32>
    %303 = arith.negf %302 : vector<4x32xf32>
    %304 = math.exp %303 : vector<4x32xf32>
    %cst_100 = arith.constant 1.000000e+00 : f32
    %305 = vector.broadcast %cst_100 : f32 to vector<4x32xf32>
    %306 = arith.addf %305, %304 : vector<4x32xf32>
    %307 = arith.divf %305, %306 : vector<4x32xf32>
    %308 = vector.extract_strided_slice %301 {offsets = [0, 32], sizes = [4, 32], strides = [1, 1]} : vector<4x128xf32> to vector<4x32xf32>
    %309 = arith.negf %308 : vector<4x32xf32>
    %310 = math.exp %309 : vector<4x32xf32>
    %cst_101 = arith.constant 1.000000e+00 : f32
    %311 = vector.broadcast %cst_101 : f32 to vector<4x32xf32>
    %312 = arith.addf %311, %310 : vector<4x32xf32>
    %313 = arith.divf %311, %312 : vector<4x32xf32>
    %314 = vector.extract_strided_slice %301 {offsets = [0, 64], sizes = [4, 32], strides = [1, 1]} : vector<4x128xf32> to vector<4x32xf32>
    %315 = math.tanh %314 : vector<4x32xf32>
    %316 = vector.extract_strided_slice %301 {offsets = [0, 96], sizes = [4, 32], strides = [1, 1]} : vector<4x128xf32> to vector<4x32xf32>
    %317 = arith.negf %316 : vector<4x32xf32>
    %318 = math.exp %317 : vector<4x32xf32>
    %cst_102 = arith.constant 1.000000e+00 : f32
    %319 = vector.broadcast %cst_102 : f32 to vector<4x32xf32>
    %320 = arith.addf %319, %318 : vector<4x32xf32>
    %321 = arith.divf %319, %320 : vector<4x32xf32>
    %322 = arith.mulf %313, %244 : vector<4x32xf32>
    %323 = arith.mulf %307, %315 : vector<4x32xf32>
    %324 = arith.addf %322, %323 : vector<4x32xf32>
    %325 = math.tanh %324 : vector<4x32xf32>
    %326 = arith.mulf %321, %325 : vector<4x32xf32>
    %327 = arith.index_cast %c3_i32 : i32 to index
    %c0_103 = arith.constant 0 : index
    %c0_104 = arith.constant 0 : index
    %328 = vector.load %arg15[%327, %c0_103, %c0_104] : memref<8x4x8xf32, #tpu.memory_space<vmem>>, vector<1x4x8xf32>
    %329 = vector.shape_cast %328 : vector<1x4x8xf32> to vector<4x8xf32>
    %330 = vector.shape_cast %276 : vector<4x8xf32> to vector<1x4x8xf32>
    tpu.vector_store %arg15[%327, %c0_103, %c0_104], %330 {strides = array<i32>} : memref<8x4x8xf32, #tpu.memory_space<vmem>>, vector<1x4x8xf32>,
    %c4_i32 = arith.constant 4 : i32
    %331 = arith.index_cast %c4_i32 : i32 to index
    %c0_105 = arith.constant 0 : index
    %c0_106 = arith.constant 0 : index
    %332 = vector.load %arg0[%331, %c0_105, %c0_106] : memref<8x4x8xf32, #tpu.memory_space<vmem>>, vector<1x4x8xf32>
    %333 = vector.shape_cast %332 : vector<1x4x8xf32> to vector<4x8xf32>
    %334 = arith.index_cast %c4_i32 : i32 to index
    %c0_107 = arith.constant 0 : index
    %c0_108 = arith.constant 0 : index
    %335 = vector.load %arg1[%334, %c0_107, %c0_108] : memref<8x4x8xf32, #tpu.memory_space<vmem>>, vector<1x4x8xf32>
    %336 = vector.shape_cast %335 : vector<1x4x8xf32> to vector<4x8xf32>
    %337 = arith.index_cast %c4_i32 : i32 to index
    %c0_109 = arith.constant 0 : index
    %c0_110 = arith.constant 0 : index
    %338 = vector.load %arg2[%337, %c0_109, %c0_110] : memref<8x4x8xf32, #tpu.memory_space<vmem>>, vector<1x4x8xf32>
    %339 = vector.shape_cast %338 : vector<1x4x8xf32> to vector<4x8xf32>
    %cst_111 = arith.constant dense<0.000000e+00> : vector<4x32xf32>
    %340 = tpu.matmul %339, %0, %cst_111 {dimension_numbers = #tpu.dot_dimension_numbers<[1], [0], [0], [1], [0, 0, 1, 1], [], []>} : vector<4x8xf32>, vector<8x32xf32>, vector<4x32xf32> -> vector<4x32xf32>
    %341 = vector.broadcast %1 : vector<1x32xf32> to vector<4x32xf32>
    %342 = arith.addf %340, %341 : vector<4x32xf32>
    %cst_112 = arith.constant 0.000000e+00 : f32
    %343 = vector.broadcast %cst_112 : f32 to vector<4x32xf32>
    %344 = arith.maximumf %342, %343 : vector<4x32xf32>
    %cst_113 = arith.constant 0.000000e+00 : f32
    %345 = vector.broadcast %cst_113 : f32 to vector<4x32xf32>
    %346 = arith.subf %345, %344 : vector<4x32xf32>
    %347 = math.exp %346 : vector<4x32xf32>
    %348 = arith.mulf %326, %347 : vector<4x32xf32>
    %cst_114 = arith.constant dense<0.000000e+00> : vector<4x8xf32>
    %349 = tpu.matmul %348, %2, %cst_114 {dimension_numbers = #tpu.dot_dimension_numbers<[1], [0], [0], [1], [0, 0, 1, 1], [], []>} : vector<4x32xf32>, vector<32x8xf32>, vector<4x8xf32> -> vector<4x8xf32>
    %350 = vector.broadcast %3 : vector<1x8xf32> to vector<4x8xf32>
    %351 = arith.addf %349, %350 : vector<4x8xf32>
    %352 = arith.mulf %336, %333 : vector<4x8xf32>
    %cst_115 = arith.constant 1.000000e+00 : f32
    %353 = vector.broadcast %cst_115 : f32 to vector<4x8xf32>
    %354 = arith.subf %353, %336 : vector<4x8xf32>
    %355 = arith.mulf %354, %351 : vector<4x8xf32>
    %356 = arith.addf %352, %355 : vector<4x8xf32>
    %357 = arith.subf %333, %351 : vector<4x8xf32>
    %358 = math.absf %357 : vector<4x8xf32>
    %359 = arith.mulf %358, %336 : vector<4x8xf32>
    %360 = vector.shape_cast %359 : vector<4x8xf32> to vector<1x4x8xf32>
    %cst_116 = arith.constant dense<0.000000e+00> : vector<1xf32>
    %361 = vector.multi_reduction <add>, %360, %cst_116 [1, 2] : vector<1x4x8xf32> to vector<1xf32>
    %362 = vector.shape_cast %361 : vector<1xf32> to vector<1x1x1xf32>
    %363 = vector.extract %362[0, 0, 0] : f32 from vector<1x1x1xf32>
    %364 = vector.broadcast %363 : f32 to vector<1x1xf32>
    %365 = vector.shape_cast %336 : vector<4x8xf32> to vector<1x4x8xf32>
    %cst_117 = arith.constant dense<0.000000e+00> : vector<1xf32>
    %366 = vector.multi_reduction <add>, %365, %cst_117 [1, 2] : vector<1x4x8xf32> to vector<1xf32>
    %367 = vector.shape_cast %366 : vector<1xf32> to vector<1x1x1xf32>
    %368 = vector.extract %367[0, 0, 0] : f32 from vector<1x1x1xf32>
    %369 = vector.broadcast %368 : f32 to vector<1x1xf32>
    %cst_118 = arith.constant 9.99999974E-6 : f32
    %370 = vector.broadcast %cst_118 : f32 to vector<1x1xf32>
    %371 = arith.addf %369, %370 : vector<1x1xf32>
    %372 = tpu.reciprocal %371 {approx = true} : vector<1x1xf32> -> vector<1x1xf32>
    %373 = arith.mulf %364, %372 : vector<1x1xf32>
    %374 = arith.addf %294, %373 : vector<1x1xf32>
    %cst_119 = arith.constant dense<0.000000e+00> : vector<4x128xf32>
    %375 = tpu.matmul %356, %4, %cst_119 {dimension_numbers = #tpu.dot_dimension_numbers<[1], [0], [0], [1], [0, 0, 1, 1], [], []>} : vector<4x8xf32>, vector<8x128xf32>, vector<4x128xf32> -> vector<4x128xf32>
    %cst_120 = arith.constant dense<0.000000e+00> : vector<4x128xf32>
    %376 = tpu.matmul %336, %5, %cst_120 {dimension_numbers = #tpu.dot_dimension_numbers<[1], [0], [0], [1], [0, 0, 1, 1], [], []>} : vector<4x8xf32>, vector<8x128xf32>, vector<4x128xf32> -> vector<4x128xf32>
    %377 = arith.addf %375, %376 : vector<4x128xf32>
    %cst_121 = arith.constant dense<0.000000e+00> : vector<4x128xf32>
    %378 = tpu.matmul %348, %6, %cst_121 {dimension_numbers = #tpu.dot_dimension_numbers<[1], [0], [0], [1], [0, 0, 1, 1], [], []>} : vector<4x32xf32>, vector<32x128xf32>, vector<4x128xf32> -> vector<4x128xf32>
    %379 = arith.addf %377, %378 : vector<4x128xf32>
    %380 = vector.broadcast %7 : vector<1x128xf32> to vector<4x128xf32>
    %381 = arith.addf %379, %380 : vector<4x128xf32>
    %382 = vector.extract_strided_slice %381 {offsets = [0, 0], sizes = [4, 32], strides = [1, 1]} : vector<4x128xf32> to vector<4x32xf32>
    %383 = arith.negf %382 : vector<4x32xf32>
    %384 = math.exp %383 : vector<4x32xf32>
    %cst_122 = arith.constant 1.000000e+00 : f32
    %385 = vector.broadcast %cst_122 : f32 to vector<4x32xf32>
    %386 = arith.addf %385, %384 : vector<4x32xf32>
    %387 = arith.divf %385, %386 : vector<4x32xf32>
    %388 = vector.extract_strided_slice %381 {offsets = [0, 32], sizes = [4, 32], strides = [1, 1]} : vector<4x128xf32> to vector<4x32xf32>
    %389 = arith.negf %388 : vector<4x32xf32>
    %390 = math.exp %389 : vector<4x32xf32>
    %cst_123 = arith.constant 1.000000e+00 : f32
    %391 = vector.broadcast %cst_123 : f32 to vector<4x32xf32>
    %392 = arith.addf %391, %390 : vector<4x32xf32>
    %393 = arith.divf %391, %392 : vector<4x32xf32>
    %394 = vector.extract_strided_slice %381 {offsets = [0, 64], sizes = [4, 32], strides = [1, 1]} : vector<4x128xf32> to vector<4x32xf32>
    %395 = math.tanh %394 : vector<4x32xf32>
    %396 = vector.extract_strided_slice %381 {offsets = [0, 96], sizes = [4, 32], strides = [1, 1]} : vector<4x128xf32> to vector<4x32xf32>
    %397 = arith.negf %396 : vector<4x32xf32>
    %398 = math.exp %397 : vector<4x32xf32>
    %cst_124 = arith.constant 1.000000e+00 : f32
    %399 = vector.broadcast %cst_124 : f32 to vector<4x32xf32>
    %400 = arith.addf %399, %398 : vector<4x32xf32>
    %401 = arith.divf %399, %400 : vector<4x32xf32>
    %402 = arith.mulf %393, %324 : vector<4x32xf32>
    %403 = arith.mulf %387, %395 : vector<4x32xf32>
    %404 = arith.addf %402, %403 : vector<4x32xf32>
    %405 = math.tanh %404 : vector<4x32xf32>
    %406 = arith.mulf %401, %405 : vector<4x32xf32>
    %407 = arith.index_cast %c4_i32 : i32 to index
    %c0_125 = arith.constant 0 : index
    %c0_126 = arith.constant 0 : index
    %408 = vector.load %arg15[%407, %c0_125, %c0_126] : memref<8x4x8xf32, #tpu.memory_space<vmem>>, vector<1x4x8xf32>
    %409 = vector.shape_cast %408 : vector<1x4x8xf32> to vector<4x8xf32>
    %410 = vector.shape_cast %356 : vector<4x8xf32> to vector<1x4x8xf32>
    tpu.vector_store %arg15[%407, %c0_125, %c0_126], %410 {strides = array<i32>} : memref<8x4x8xf32, #tpu.memory_space<vmem>>, vector<1x4x8xf32>,
    %c5_i32 = arith.constant 5 : i32
    %411 = arith.index_cast %c5_i32 : i32 to index
    %c0_127 = arith.constant 0 : index
    %c0_128 = arith.constant 0 : index
    %412 = vector.load %arg0[%411, %c0_127, %c0_128] : memref<8x4x8xf32, #tpu.memory_space<vmem>>, vector<1x4x8xf32>
    %413 = vector.shape_cast %412 : vector<1x4x8xf32> to vector<4x8xf32>
    %414 = arith.index_cast %c5_i32 : i32 to index
    %c0_129 = arith.constant 0 : index
    %c0_130 = arith.constant 0 : index
    %415 = vector.load %arg1[%414, %c0_129, %c0_130] : memref<8x4x8xf32, #tpu.memory_space<vmem>>, vector<1x4x8xf32>
    %416 = vector.shape_cast %415 : vector<1x4x8xf32> to vector<4x8xf32>
    %417 = arith.index_cast %c5_i32 : i32 to index
    %c0_131 = arith.constant 0 : index
    %c0_132 = arith.constant 0 : index
    %418 = vector.load %arg2[%417, %c0_131, %c0_132] : memref<8x4x8xf32, #tpu.memory_space<vmem>>, vector<1x4x8xf32>
    %419 = vector.shape_cast %418 : vector<1x4x8xf32> to vector<4x8xf32>
    %cst_133 = arith.constant dense<0.000000e+00> : vector<4x32xf32>
    %420 = tpu.matmul %419, %0, %cst_133 {dimension_numbers = #tpu.dot_dimension_numbers<[1], [0], [0], [1], [0, 0, 1, 1], [], []>} : vector<4x8xf32>, vector<8x32xf32>, vector<4x32xf32> -> vector<4x32xf32>
    %421 = vector.broadcast %1 : vector<1x32xf32> to vector<4x32xf32>
    %422 = arith.addf %420, %421 : vector<4x32xf32>
    %cst_134 = arith.constant 0.000000e+00 : f32
    %423 = vector.broadcast %cst_134 : f32 to vector<4x32xf32>
    %424 = arith.maximumf %422, %423 : vector<4x32xf32>
    %cst_135 = arith.constant 0.000000e+00 : f32
    %425 = vector.broadcast %cst_135 : f32 to vector<4x32xf32>
    %426 = arith.subf %425, %424 : vector<4x32xf32>
    %427 = math.exp %426 : vector<4x32xf32>
    %428 = arith.mulf %406, %427 : vector<4x32xf32>
    %cst_136 = arith.constant dense<0.000000e+00> : vector<4x8xf32>
    %429 = tpu.matmul %428, %2, %cst_136 {dimension_numbers = #tpu.dot_dimension_numbers<[1], [0], [0], [1], [0, 0, 1, 1], [], []>} : vector<4x32xf32>, vector<32x8xf32>, vector<4x8xf32> -> vector<4x8xf32>
    %430 = vector.broadcast %3 : vector<1x8xf32> to vector<4x8xf32>
    %431 = arith.addf %429, %430 : vector<4x8xf32>
    %432 = arith.mulf %416, %413 : vector<4x8xf32>
    %cst_137 = arith.constant 1.000000e+00 : f32
    %433 = vector.broadcast %cst_137 : f32 to vector<4x8xf32>
    %434 = arith.subf %433, %416 : vector<4x8xf32>
    %435 = arith.mulf %434, %431 : vector<4x8xf32>
    %436 = arith.addf %432, %435 : vector<4x8xf32>
    %437 = arith.subf %413, %431 : vector<4x8xf32>
    %438 = math.absf %437 : vector<4x8xf32>
    %439 = arith.mulf %438, %416 : vector<4x8xf32>
    %440 = vector.shape_cast %439 : vector<4x8xf32> to vector<1x4x8xf32>
    %cst_138 = arith.constant dense<0.000000e+00> : vector<1xf32>
    %441 = vector.multi_reduction <add>, %440, %cst_138 [1, 2] : vector<1x4x8xf32> to vector<1xf32>
    %442 = vector.shape_cast %441 : vector<1xf32> to vector<1x1x1xf32>
    %443 = vector.extract %442[0, 0, 0] : f32 from vector<1x1x1xf32>
    %444 = vector.broadcast %443 : f32 to vector<1x1xf32>
    %445 = vector.shape_cast %416 : vector<4x8xf32> to vector<1x4x8xf32>
    %cst_139 = arith.constant dense<0.000000e+00> : vector<1xf32>
    %446 = vector.multi_reduction <add>, %445, %cst_139 [1, 2] : vector<1x4x8xf32> to vector<1xf32>
    %447 = vector.shape_cast %446 : vector<1xf32> to vector<1x1x1xf32>
    %448 = vector.extract %447[0, 0, 0] : f32 from vector<1x1x1xf32>
    %449 = vector.broadcast %448 : f32 to vector<1x1xf32>
    %cst_140 = arith.constant 9.99999974E-6 : f32
    %450 = vector.broadcast %cst_140 : f32 to vector<1x1xf32>
    %451 = arith.addf %449, %450 : vector<1x1xf32>
    %452 = tpu.reciprocal %451 {approx = true} : vector<1x1xf32> -> vector<1x1xf32>
    %453 = arith.mulf %444, %452 : vector<1x1xf32>
    %454 = arith.addf %374, %453 : vector<1x1xf32>
    %cst_141 = arith.constant dense<0.000000e+00> : vector<4x128xf32>
    %455 = tpu.matmul %436, %4, %cst_141 {dimension_numbers = #tpu.dot_dimension_numbers<[1], [0], [0], [1], [0, 0, 1, 1], [], []>} : vector<4x8xf32>, vector<8x128xf32>, vector<4x128xf32> -> vector<4x128xf32>
    %cst_142 = arith.constant dense<0.000000e+00> : vector<4x128xf32>
    %456 = tpu.matmul %416, %5, %cst_142 {dimension_numbers = #tpu.dot_dimension_numbers<[1], [0], [0], [1], [0, 0, 1, 1], [], []>} : vector<4x8xf32>, vector<8x128xf32>, vector<4x128xf32> -> vector<4x128xf32>
    %457 = arith.addf %455, %456 : vector<4x128xf32>
    %cst_143 = arith.constant dense<0.000000e+00> : vector<4x128xf32>
    %458 = tpu.matmul %428, %6, %cst_143 {dimension_numbers = #tpu.dot_dimension_numbers<[1], [0], [0], [1], [0, 0, 1, 1], [], []>} : vector<4x32xf32>, vector<32x128xf32>, vector<4x128xf32> -> vector<4x128xf32>
    %459 = arith.addf %457, %458 : vector<4x128xf32>
    %460 = vector.broadcast %7 : vector<1x128xf32> to vector<4x128xf32>
    %461 = arith.addf %459, %460 : vector<4x128xf32>
    %462 = vector.extract_strided_slice %461 {offsets = [0, 0], sizes = [4, 32], strides = [1, 1]} : vector<4x128xf32> to vector<4x32xf32>
    %463 = arith.negf %462 : vector<4x32xf32>
    %464 = math.exp %463 : vector<4x32xf32>
    %cst_144 = arith.constant 1.000000e+00 : f32
    %465 = vector.broadcast %cst_144 : f32 to vector<4x32xf32>
    %466 = arith.addf %465, %464 : vector<4x32xf32>
    %467 = arith.divf %465, %466 : vector<4x32xf32>
    %468 = vector.extract_strided_slice %461 {offsets = [0, 32], sizes = [4, 32], strides = [1, 1]} : vector<4x128xf32> to vector<4x32xf32>
    %469 = arith.negf %468 : vector<4x32xf32>
    %470 = math.exp %469 : vector<4x32xf32>
    %cst_145 = arith.constant 1.000000e+00 : f32
    %471 = vector.broadcast %cst_145 : f32 to vector<4x32xf32>
    %472 = arith.addf %471, %470 : vector<4x32xf32>
    %473 = arith.divf %471, %472 : vector<4x32xf32>
    %474 = vector.extract_strided_slice %461 {offsets = [0, 64], sizes = [4, 32], strides = [1, 1]} : vector<4x128xf32> to vector<4x32xf32>
    %475 = math.tanh %474 : vector<4x32xf32>
    %476 = vector.extract_strided_slice %461 {offsets = [0, 96], sizes = [4, 32], strides = [1, 1]} : vector<4x128xf32> to vector<4x32xf32>
    %477 = arith.negf %476 : vector<4x32xf32>
    %478 = math.exp %477 : vector<4x32xf32>
    %cst_146 = arith.constant 1.000000e+00 : f32
    %479 = vector.broadcast %cst_146 : f32 to vector<4x32xf32>
    %480 = arith.addf %479, %478 : vector<4x32xf32>
    %481 = arith.divf %479, %480 : vector<4x32xf32>
    %482 = arith.mulf %473, %404 : vector<4x32xf32>
    %483 = arith.mulf %467, %475 : vector<4x32xf32>
    %484 = arith.addf %482, %483 : vector<4x32xf32>
    %485 = math.tanh %484 : vector<4x32xf32>
    %486 = arith.mulf %481, %485 : vector<4x32xf32>
    %487 = arith.index_cast %c5_i32 : i32 to index
    %c0_147 = arith.constant 0 : index
    %c0_148 = arith.constant 0 : index
    %488 = vector.load %arg15[%487, %c0_147, %c0_148] : memref<8x4x8xf32, #tpu.memory_space<vmem>>, vector<1x4x8xf32>
    %489 = vector.shape_cast %488 : vector<1x4x8xf32> to vector<4x8xf32>
    %490 = vector.shape_cast %436 : vector<4x8xf32> to vector<1x4x8xf32>
    tpu.vector_store %arg15[%487, %c0_147, %c0_148], %490 {strides = array<i32>} : memref<8x4x8xf32, #tpu.memory_space<vmem>>, vector<1x4x8xf32>,
    %c6_i32 = arith.constant 6 : i32
    %491 = arith.index_cast %c6_i32 : i32 to index
    %c0_149 = arith.constant 0 : index
    %c0_150 = arith.constant 0 : index
    %492 = vector.load %arg0[%491, %c0_149, %c0_150] : memref<8x4x8xf32, #tpu.memory_space<vmem>>, vector<1x4x8xf32>
    %493 = vector.shape_cast %492 : vector<1x4x8xf32> to vector<4x8xf32>
    %494 = arith.index_cast %c6_i32 : i32 to index
    %c0_151 = arith.constant 0 : index
    %c0_152 = arith.constant 0 : index
    %495 = vector.load %arg1[%494, %c0_151, %c0_152] : memref<8x4x8xf32, #tpu.memory_space<vmem>>, vector<1x4x8xf32>
    %496 = vector.shape_cast %495 : vector<1x4x8xf32> to vector<4x8xf32>
    %497 = arith.index_cast %c6_i32 : i32 to index
    %c0_153 = arith.constant 0 : index
    %c0_154 = arith.constant 0 : index
    %498 = vector.load %arg2[%497, %c0_153, %c0_154] : memref<8x4x8xf32, #tpu.memory_space<vmem>>, vector<1x4x8xf32>
    %499 = vector.shape_cast %498 : vector<1x4x8xf32> to vector<4x8xf32>
    %cst_155 = arith.constant dense<0.000000e+00> : vector<4x32xf32>
    %500 = tpu.matmul %499, %0, %cst_155 {dimension_numbers = #tpu.dot_dimension_numbers<[1], [0], [0], [1], [0, 0, 1, 1], [], []>} : vector<4x8xf32>, vector<8x32xf32>, vector<4x32xf32> -> vector<4x32xf32>
    %501 = vector.broadcast %1 : vector<1x32xf32> to vector<4x32xf32>
    %502 = arith.addf %500, %501 : vector<4x32xf32>
    %cst_156 = arith.constant 0.000000e+00 : f32
    %503 = vector.broadcast %cst_156 : f32 to vector<4x32xf32>
    %504 = arith.maximumf %502, %503 : vector<4x32xf32>
    %cst_157 = arith.constant 0.000000e+00 : f32
    %505 = vector.broadcast %cst_157 : f32 to vector<4x32xf32>
    %506 = arith.subf %505, %504 : vector<4x32xf32>
    %507 = math.exp %506 : vector<4x32xf32>
    %508 = arith.mulf %486, %507 : vector<4x32xf32>
    %cst_158 = arith.constant dense<0.000000e+00> : vector<4x8xf32>
    %509 = tpu.matmul %508, %2, %cst_158 {dimension_numbers = #tpu.dot_dimension_numbers<[1], [0], [0], [1], [0, 0, 1, 1], [], []>} : vector<4x32xf32>, vector<32x8xf32>, vector<4x8xf32> -> vector<4x8xf32>
    %510 = vector.broadcast %3 : vector<1x8xf32> to vector<4x8xf32>
    %511 = arith.addf %509, %510 : vector<4x8xf32>
    %512 = arith.mulf %496, %493 : vector<4x8xf32>
    %cst_159 = arith.constant 1.000000e+00 : f32
    %513 = vector.broadcast %cst_159 : f32 to vector<4x8xf32>
    %514 = arith.subf %513, %496 : vector<4x8xf32>
    %515 = arith.mulf %514, %511 : vector<4x8xf32>
    %516 = arith.addf %512, %515 : vector<4x8xf32>
    %517 = arith.subf %493, %511 : vector<4x8xf32>
    %518 = math.absf %517 : vector<4x8xf32>
    %519 = arith.mulf %518, %496 : vector<4x8xf32>
    %520 = vector.shape_cast %519 : vector<4x8xf32> to vector<1x4x8xf32>
    %cst_160 = arith.constant dense<0.000000e+00> : vector<1xf32>
    %521 = vector.multi_reduction <add>, %520, %cst_160 [1, 2] : vector<1x4x8xf32> to vector<1xf32>
    %522 = vector.shape_cast %521 : vector<1xf32> to vector<1x1x1xf32>
    %523 = vector.extract %522[0, 0, 0] : f32 from vector<1x1x1xf32>
    %524 = vector.broadcast %523 : f32 to vector<1x1xf32>
    %525 = vector.shape_cast %496 : vector<4x8xf32> to vector<1x4x8xf32>
    %cst_161 = arith.constant dense<0.000000e+00> : vector<1xf32>
    %526 = vector.multi_reduction <add>, %525, %cst_161 [1, 2] : vector<1x4x8xf32> to vector<1xf32>
    %527 = vector.shape_cast %526 : vector<1xf32> to vector<1x1x1xf32>
    %528 = vector.extract %527[0, 0, 0] : f32 from vector<1x1x1xf32>
    %529 = vector.broadcast %528 : f32 to vector<1x1xf32>
    %cst_162 = arith.constant 9.99999974E-6 : f32
    %530 = vector.broadcast %cst_162 : f32 to vector<1x1xf32>
    %531 = arith.addf %529, %530 : vector<1x1xf32>
    %532 = tpu.reciprocal %531 {approx = true} : vector<1x1xf32> -> vector<1x1xf32>
    %533 = arith.mulf %524, %532 : vector<1x1xf32>
    %534 = arith.addf %454, %533 : vector<1x1xf32>
    %cst_163 = arith.constant dense<0.000000e+00> : vector<4x128xf32>
    %535 = tpu.matmul %516, %4, %cst_163 {dimension_numbers = #tpu.dot_dimension_numbers<[1], [0], [0], [1], [0, 0, 1, 1], [], []>} : vector<4x8xf32>, vector<8x128xf32>, vector<4x128xf32> -> vector<4x128xf32>
    %cst_164 = arith.constant dense<0.000000e+00> : vector<4x128xf32>
    %536 = tpu.matmul %496, %5, %cst_164 {dimension_numbers = #tpu.dot_dimension_numbers<[1], [0], [0], [1], [0, 0, 1, 1], [], []>} : vector<4x8xf32>, vector<8x128xf32>, vector<4x128xf32> -> vector<4x128xf32>
    %537 = arith.addf %535, %536 : vector<4x128xf32>
    %cst_165 = arith.constant dense<0.000000e+00> : vector<4x128xf32>
    %538 = tpu.matmul %508, %6, %cst_165 {dimension_numbers = #tpu.dot_dimension_numbers<[1], [0], [0], [1], [0, 0, 1, 1], [], []>} : vector<4x32xf32>, vector<32x128xf32>, vector<4x128xf32> -> vector<4x128xf32>
    %539 = arith.addf %537, %538 : vector<4x128xf32>
    %540 = vector.broadcast %7 : vector<1x128xf32> to vector<4x128xf32>
    %541 = arith.addf %539, %540 : vector<4x128xf32>
    %542 = vector.extract_strided_slice %541 {offsets = [0, 0], sizes = [4, 32], strides = [1, 1]} : vector<4x128xf32> to vector<4x32xf32>
    %543 = arith.negf %542 : vector<4x32xf32>
    %544 = math.exp %543 : vector<4x32xf32>
    %cst_166 = arith.constant 1.000000e+00 : f32
    %545 = vector.broadcast %cst_166 : f32 to vector<4x32xf32>
    %546 = arith.addf %545, %544 : vector<4x32xf32>
    %547 = arith.divf %545, %546 : vector<4x32xf32>
    %548 = vector.extract_strided_slice %541 {offsets = [0, 32], sizes = [4, 32], strides = [1, 1]} : vector<4x128xf32> to vector<4x32xf32>
    %549 = arith.negf %548 : vector<4x32xf32>
    %550 = math.exp %549 : vector<4x32xf32>
    %cst_167 = arith.constant 1.000000e+00 : f32
    %551 = vector.broadcast %cst_167 : f32 to vector<4x32xf32>
    %552 = arith.addf %551, %550 : vector<4x32xf32>
    %553 = arith.divf %551, %552 : vector<4x32xf32>
    %554 = vector.extract_strided_slice %541 {offsets = [0, 64], sizes = [4, 32], strides = [1, 1]} : vector<4x128xf32> to vector<4x32xf32>
    %555 = math.tanh %554 : vector<4x32xf32>
    %556 = vector.extract_strided_slice %541 {offsets = [0, 96], sizes = [4, 32], strides = [1, 1]} : vector<4x128xf32> to vector<4x32xf32>
    %557 = arith.negf %556 : vector<4x32xf32>
    %558 = math.exp %557 : vector<4x32xf32>
    %cst_168 = arith.constant 1.000000e+00 : f32
    %559 = vector.broadcast %cst_168 : f32 to vector<4x32xf32>
    %560 = arith.addf %559, %558 : vector<4x32xf32>
    %561 = arith.divf %559, %560 : vector<4x32xf32>
    %562 = arith.mulf %553, %484 : vector<4x32xf32>
    %563 = arith.mulf %547, %555 : vector<4x32xf32>
    %564 = arith.addf %562, %563 : vector<4x32xf32>
    %565 = math.tanh %564 : vector<4x32xf32>
    %566 = arith.mulf %561, %565 : vector<4x32xf32>
    %567 = arith.index_cast %c6_i32 : i32 to index
    %c0_169 = arith.constant 0 : index
    %c0_170 = arith.constant 0 : index
    %568 = vector.load %arg15[%567, %c0_169, %c0_170] : memref<8x4x8xf32, #tpu.memory_space<vmem>>, vector<1x4x8xf32>
    %569 = vector.shape_cast %568 : vector<1x4x8xf32> to vector<4x8xf32>
    %570 = vector.shape_cast %516 : vector<4x8xf32> to vector<1x4x8xf32>
    tpu.vector_store %arg15[%567, %c0_169, %c0_170], %570 {strides = array<i32>} : memref<8x4x8xf32, #tpu.memory_space<vmem>>, vector<1x4x8xf32>,
    %c7_i32 = arith.constant 7 : i32
    %571 = arith.index_cast %c7_i32 : i32 to index
    %c0_171 = arith.constant 0 : index
    %c0_172 = arith.constant 0 : index
    %572 = vector.load %arg0[%571, %c0_171, %c0_172] : memref<8x4x8xf32, #tpu.memory_space<vmem>>, vector<1x4x8xf32>
    %573 = vector.shape_cast %572 : vector<1x4x8xf32> to vector<4x8xf32>
    %574 = arith.index_cast %c7_i32 : i32 to index
    %c0_173 = arith.constant 0 : index
    %c0_174 = arith.constant 0 : index
    %575 = vector.load %arg1[%574, %c0_173, %c0_174] : memref<8x4x8xf32, #tpu.memory_space<vmem>>, vector<1x4x8xf32>
    %576 = vector.shape_cast %575 : vector<1x4x8xf32> to vector<4x8xf32>
    %577 = arith.index_cast %c7_i32 : i32 to index
    %c0_175 = arith.constant 0 : index
    %c0_176 = arith.constant 0 : index
    %578 = vector.load %arg2[%577, %c0_175, %c0_176] : memref<8x4x8xf32, #tpu.memory_space<vmem>>, vector<1x4x8xf32>
    %579 = vector.shape_cast %578 : vector<1x4x8xf32> to vector<4x8xf32>
    %cst_177 = arith.constant dense<0.000000e+00> : vector<4x32xf32>
    %580 = tpu.matmul %579, %0, %cst_177 {dimension_numbers = #tpu.dot_dimension_numbers<[1], [0], [0], [1], [0, 0, 1, 1], [], []>} : vector<4x8xf32>, vector<8x32xf32>, vector<4x32xf32> -> vector<4x32xf32>
    %581 = vector.broadcast %1 : vector<1x32xf32> to vector<4x32xf32>
    %582 = arith.addf %580, %581 : vector<4x32xf32>
    %cst_178 = arith.constant 0.000000e+00 : f32
    %583 = vector.broadcast %cst_178 : f32 to vector<4x32xf32>
    %584 = arith.maximumf %582, %583 : vector<4x32xf32>
    %cst_179 = arith.constant 0.000000e+00 : f32
    %585 = vector.broadcast %cst_179 : f32 to vector<4x32xf32>
    %586 = arith.subf %585, %584 : vector<4x32xf32>
    %587 = math.exp %586 : vector<4x32xf32>
    %588 = arith.mulf %566, %587 : vector<4x32xf32>
    %cst_180 = arith.constant dense<0.000000e+00> : vector<4x8xf32>
    %589 = tpu.matmul %588, %2, %cst_180 {dimension_numbers = #tpu.dot_dimension_numbers<[1], [0], [0], [1], [0, 0, 1, 1], [], []>} : vector<4x32xf32>, vector<32x8xf32>, vector<4x8xf32> -> vector<4x8xf32>
    %590 = vector.broadcast %3 : vector<1x8xf32> to vector<4x8xf32>
    %591 = arith.addf %589, %590 : vector<4x8xf32>
    %592 = arith.mulf %576, %573 : vector<4x8xf32>
    %cst_181 = arith.constant 1.000000e+00 : f32
    %593 = vector.broadcast %cst_181 : f32 to vector<4x8xf32>
    %594 = arith.subf %593, %576 : vector<4x8xf32>
    %595 = arith.mulf %594, %591 : vector<4x8xf32>
    %596 = arith.addf %592, %595 : vector<4x8xf32>
    %597 = arith.subf %573, %591 : vector<4x8xf32>
    %598 = math.absf %597 : vector<4x8xf32>
    %599 = arith.mulf %598, %576 : vector<4x8xf32>
    %600 = vector.shape_cast %599 : vector<4x8xf32> to vector<1x4x8xf32>
    %cst_182 = arith.constant dense<0.000000e+00> : vector<1xf32>
    %601 = vector.multi_reduction <add>, %600, %cst_182 [1, 2] : vector<1x4x8xf32> to vector<1xf32>
    %602 = vector.shape_cast %601 : vector<1xf32> to vector<1x1x1xf32>
    %603 = vector.extract %602[0, 0, 0] : f32 from vector<1x1x1xf32>
    %604 = vector.broadcast %603 : f32 to vector<1x1xf32>
    %605 = vector.shape_cast %576 : vector<4x8xf32> to vector<1x4x8xf32>
    %cst_183 = arith.constant dense<0.000000e+00> : vector<1xf32>
    %606 = vector.multi_reduction <add>, %605, %cst_183 [1, 2] : vector<1x4x8xf32> to vector<1xf32>
    %607 = vector.shape_cast %606 : vector<1xf32> to vector<1x1x1xf32>
    %608 = vector.extract %607[0, 0, 0] : f32 from vector<1x1x1xf32>
    %609 = vector.broadcast %608 : f32 to vector<1x1xf32>
    %cst_184 = arith.constant 9.99999974E-6 : f32
    %610 = vector.broadcast %cst_184 : f32 to vector<1x1xf32>
    %611 = arith.addf %609, %610 : vector<1x1xf32>
    %612 = tpu.reciprocal %611 {approx = true} : vector<1x1xf32> -> vector<1x1xf32>
    %613 = arith.mulf %604, %612 : vector<1x1xf32>
    %614 = arith.addf %534, %613 : vector<1x1xf32>
    %cst_185 = arith.constant dense<0.000000e+00> : vector<4x128xf32>
    %615 = tpu.matmul %596, %4, %cst_185 {dimension_numbers = #tpu.dot_dimension_numbers<[1], [0], [0], [1], [0, 0, 1, 1], [], []>} : vector<4x8xf32>, vector<8x128xf32>, vector<4x128xf32> -> vector<4x128xf32>
    %cst_186 = arith.constant dense<0.000000e+00> : vector<4x128xf32>
    %616 = tpu.matmul %576, %5, %cst_186 {dimension_numbers = #tpu.dot_dimension_numbers<[1], [0], [0], [1], [0, 0, 1, 1], [], []>} : vector<4x8xf32>, vector<8x128xf32>, vector<4x128xf32> -> vector<4x128xf32>
    %617 = arith.addf %615, %616 : vector<4x128xf32>
    %cst_187 = arith.constant dense<0.000000e+00> : vector<4x128xf32>
    %618 = tpu.matmul %588, %6, %cst_187 {dimension_numbers = #tpu.dot_dimension_numbers<[1], [0], [0], [1], [0, 0, 1, 1], [], []>} : vector<4x32xf32>, vector<32x128xf32>, vector<4x128xf32> -> vector<4x128xf32>
    %619 = arith.addf %617, %618 : vector<4x128xf32>
    %620 = vector.broadcast %7 : vector<1x128xf32> to vector<4x128xf32>
    %621 = arith.addf %619, %620 : vector<4x128xf32>
    %622 = vector.extract_strided_slice %621 {offsets = [0, 0], sizes = [4, 32], strides = [1, 1]} : vector<4x128xf32> to vector<4x32xf32>
    %623 = arith.negf %622 : vector<4x32xf32>
    %624 = math.exp %623 : vector<4x32xf32>
    %cst_188 = arith.constant 1.000000e+00 : f32
    %625 = vector.broadcast %cst_188 : f32 to vector<4x32xf32>
    %626 = arith.addf %625, %624 : vector<4x32xf32>
    %627 = arith.divf %625, %626 : vector<4x32xf32>
    %628 = vector.extract_strided_slice %621 {offsets = [0, 32], sizes = [4, 32], strides = [1, 1]} : vector<4x128xf32> to vector<4x32xf32>
    %629 = arith.negf %628 : vector<4x32xf32>
    %630 = math.exp %629 : vector<4x32xf32>
    %cst_189 = arith.constant 1.000000e+00 : f32
    %631 = vector.broadcast %cst_189 : f32 to vector<4x32xf32>
    %632 = arith.addf %631, %630 : vector<4x32xf32>
    %633 = arith.divf %631, %632 : vector<4x32xf32>
    %634 = vector.extract_strided_slice %621 {offsets = [0, 64], sizes = [4, 32], strides = [1, 1]} : vector<4x128xf32> to vector<4x32xf32>
    %635 = math.tanh %634 : vector<4x32xf32>
    %636 = vector.extract_strided_slice %621 {offsets = [0, 96], sizes = [4, 32], strides = [1, 1]} : vector<4x128xf32> to vector<4x32xf32>
    %637 = arith.negf %636 : vector<4x32xf32>
    %638 = math.exp %637 : vector<4x32xf32>
    %cst_190 = arith.constant 1.000000e+00 : f32
    %639 = vector.broadcast %cst_190 : f32 to vector<4x32xf32>
    %640 = arith.addf %639, %638 : vector<4x32xf32>
    %641 = arith.divf %639, %640 : vector<4x32xf32>
    %642 = arith.mulf %633, %564 : vector<4x32xf32>
    %643 = arith.mulf %627, %635 : vector<4x32xf32>
    %644 = arith.addf %642, %643 : vector<4x32xf32>
    %645 = math.tanh %644 : vector<4x32xf32>
    %646 = arith.mulf %641, %645 : vector<4x32xf32>
    %647 = arith.index_cast %c7_i32 : i32 to index
    %c0_191 = arith.constant 0 : index
    %c0_192 = arith.constant 0 : index
    %648 = vector.load %arg15[%647, %c0_191, %c0_192] : memref<8x4x8xf32, #tpu.memory_space<vmem>>, vector<1x4x8xf32>
    %649 = vector.shape_cast %648 : vector<1x4x8xf32> to vector<4x8xf32>
    %650 = vector.shape_cast %596 : vector<4x8xf32> to vector<1x4x8xf32>
    tpu.vector_store %arg15[%647, %c0_191, %c0_192], %650 {strides = array<i32>} : memref<8x4x8xf32, #tpu.memory_space<vmem>>, vector<1x4x8xf32>,
    %c8_i32 = arith.constant 8 : i32
    %c0_193 = arith.constant 0 : index
    %c0_194 = arith.constant 0 : index
    %651 = vector.load %arg17[%c0_193, %c0_194] : memref<1x1xf32, #tpu.memory_space<vmem>>, vector<1x1xf32>
    tpu.vector_store %arg17[%c0_193, %c0_194], %614 {strides = array<i32>} : memref<1x1xf32, #tpu.memory_space<vmem>>, vector<1x1xf32>,
    %c0_195 = arith.constant 0 : index
    %c0_196 = arith.constant 0 : index
    %652 = vector.load %arg13[%c0_195, %c0_196] : memref<32x1xf32, #tpu.memory_space<vmem>>, vector<32x1xf32>
    %cst_197 = arith.constant dense<0.000000e+00> : vector<4x1xf32>
    %653 = tpu.matmul %646, %652, %cst_197 {dimension_numbers = #tpu.dot_dimension_numbers<[1], [0], [0], [1], [0, 0, 1, 1], [], []>} : vector<4x32xf32>, vector<32x1xf32>, vector<4x1xf32> -> vector<4x1xf32>
    %c0_198 = arith.constant 0 : index
    %c0_199 = arith.constant 0 : index
    %654 = vector.load %arg14[%c0_198, %c0_199] : memref<1x1xf32, #tpu.memory_space<vmem>>, vector<1x1xf32>
    %655 = vector.broadcast %654 : vector<1x1xf32> to vector<4x1xf32>
    %656 = arith.addf %653, %655 : vector<4x1xf32>
    %c0_200 = arith.constant 0 : index
    %c0_201 = arith.constant 0 : index
    %657 = vector.load %arg3[%c0_200, %c0_201] : memref<4x1xf32, #tpu.memory_space<vmem>>, vector<4x1xf32>
    %c0_202 = arith.constant 0 : index
    %c0_203 = arith.constant 0 : index
    %658 = vector.load %arg4[%c0_202, %c0_203] : memref<4x1xf32, #tpu.memory_space<vmem>>, vector<4x1xf32>
    %cst_204 = arith.constant 0.000000e+00 : f32
    %659 = vector.broadcast %cst_204 : f32 to vector<4x1xf32>
    %660 = arith.subf %659, %656 : vector<4x1xf32>
    %cst_205 = arith.constant 0.000000e+00 : f32
    %661 = vector.broadcast %cst_205 : f32 to vector<4x1xf32>
    %662 = arith.maximumf %660, %661 : vector<4x1xf32>
    %663 = arith.mulf %656, %657 : vector<4x1xf32>
    %664 = arith.subf %656, %663 : vector<4x1xf32>
    %665 = arith.addf %664, %662 : vector<4x1xf32>
    %cst_206 = arith.constant 0.000000e+00 : f32
    %666 = vector.broadcast %cst_206 : f32 to vector<4x1xf32>
    %667 = arith.subf %666, %662 : vector<4x1xf32>
    %668 = math.exp %667 : vector<4x1xf32>
    %cst_207 = arith.constant 0.000000e+00 : f32
    %669 = vector.broadcast %cst_207 : f32 to vector<4x1xf32>
    %670 = arith.subf %669, %656 : vector<4x1xf32>
    %671 = arith.subf %670, %662 : vector<4x1xf32>
    %672 = math.exp %671 : vector<4x1xf32>
    %673 = arith.addf %668, %672 : vector<4x1xf32>
    %674 = math.log %673 : vector<4x1xf32>
    %675 = arith.addf %665, %674 : vector<4x1xf32>
    %676 = vector.shape_cast %658 : vector<4x1xf32> to vector<1x4x1xf32>
    %cst_208 = arith.constant dense<0.000000e+00> : vector<1xf32>
    %677 = vector.multi_reduction <add>, %676, %cst_208 [1, 2] : vector<1x4x1xf32> to vector<1xf32>
    %678 = vector.shape_cast %677 : vector<1xf32> to vector<1x1x1xf32>
    %679 = vector.extract %678[0, 0, 0] : f32 from vector<1x1x1xf32>
    %680 = vector.broadcast %679 : f32 to vector<1x1xf32>
    %cst_209 = arith.constant 9.99999974E-6 : f32
    %681 = vector.broadcast %cst_209 : f32 to vector<1x1xf32>
    %682 = arith.addf %680, %681 : vector<1x1xf32>
    %683 = arith.mulf %675, %658 : vector<4x1xf32>
    %684 = vector.shape_cast %683 : vector<4x1xf32> to vector<1x4x1xf32>
    %cst_210 = arith.constant dense<0.000000e+00> : vector<1xf32>
    %685 = vector.multi_reduction <add>, %684, %cst_210 [1, 2] : vector<1x4x1xf32> to vector<1xf32>
    %686 = vector.shape_cast %685 : vector<1xf32> to vector<1x1x1xf32>
    %687 = vector.extract %686[0, 0, 0] : f32 from vector<1x1x1xf32>
    %688 = vector.broadcast %687 : f32 to vector<1x1xf32>
    %689 = tpu.reciprocal %682 {approx = true} : vector<1x1xf32> -> vector<1x1xf32>
    %690 = arith.mulf %688, %689 : vector<1x1xf32>
    %c0_211 = arith.constant 0 : index
    %c0_212 = arith.constant 0 : index
    %691 = vector.load %arg18[%c0_211, %c0_212] : memref<1x1xf32, #tpu.memory_space<vmem>>, vector<1x1xf32>
    tpu.vector_store %arg18[%c0_211, %c0_212], %690 {strides = array<i32>} : memref<1x1xf32, #tpu.memory_space<vmem>>, vector<1x1xf32>,
    %692 = arith.negf %656 : vector<4x1xf32>
    %693 = math.exp %692 : vector<4x1xf32>
    %cst_213 = arith.constant 1.000000e+00 : f32
    %694 = vector.broadcast %cst_213 : f32 to vector<4x1xf32>
    %695 = arith.addf %694, %693 : vector<4x1xf32>
    %696 = arith.divf %694, %695 : vector<4x1xf32>
    %c0_214 = arith.constant 0 : index
    %c0_215 = arith.constant 0 : index
    %697 = vector.load %arg16[%c0_214, %c0_215] : memref<4x1xf32, #tpu.memory_space<vmem>>, vector<4x1xf32>
    tpu.vector_store %arg16[%c0_214, %c0_215], %696 {strides = array<i32>} : memref<4x1xf32, #tpu.memory_space<vmem>>, vector<4x1xf32>,
    return
  }
}

</mosaic_0001>

<bundles_post_ra>
// kernel: tpu_custom_call.1
= control target key start
LH: loop header
LB: loop body
LE: loop exit
PB: predicated region body
PF: predicated region fallthrough
CT: control target
= control target key end

     0   :  { %s2996_s0 = inlined_call_operand.vmem [shape: f32[8,4,8], index: 0, kind: input, shape index: {}]   ;;  %s2997_s1 = inlined_call_operand.vmem [shape: f32[8,4,8], index: 1, kind: input, shape index: {}]   ;;  %s2998_s2 = inlined_call_operand.hbm [shape: f32[8,4,8], index: 2, kind: input, shape index: {}]   ;;  %s2999_s3 = inlined_call_operand.vmem [shape: f32[4,1], index: 3, kind: input, shape index: {}]   ;;  %s3000_s4 = inlined_call_operand.vmem [shape: f32[4,1], index: 4, kind: input, shape index: {}]   ;;  %s3001_s5 = inlined_call_operand.vmem [shape: f32[8,32], index: 5, kind: input, shape index: {}]   ;;  %s3002_s6 = inlined_call_operand.vmem [shape: f32[1,32], index: 6, kind: input, shape index: {}]   ;;  %s3003_s7 = inlined_call_operand.vmem [shape: f32[32,8], index: 7, kind: input, shape index: {}]   ;;  %s3004_s8 = inlined_call_operand.vmem [shape: f32[1,8], index: 8, kind: input, shape index: {}]   ;;  %s3005_s9 = inlined_call_operand.hbm [shape: f32[8,128], index: 9, kind: input, shape index: {}]   ;;  %s3006_s10 = inlined_call_operand.hbm [shape: f32[8,128], index: 10, kind: input, shape index: {}]   ;;  %s3007_s11 = inlined_call_operand.hbm [shape: f32[32,128], index: 11, kind: input, shape index: {}]   ;;  %s3008_s12 = inlined_call_operand.vmem [shape: f32[1,128], index: 12, kind: input, shape index: {}]   ;;  %s3009_s13 = inlined_call_operand.vmem [shape: f32[32,1], index: 13, kind: input, shape index: {}]   ;;  %s3010_s14 = inlined_call_operand.<no memory space> [shape: f32[1,1], index: 14, kind: input, shape index: {}]   ;;  %s3011_s15 = inlined_call_operand.hbm [shape: f32[8,4,8], index: 15, kind: output, shape index: {0}]   ;;  %s3012_s16 = inlined_call_operand.vmem [shape: f32[4,1], index: 16, kind: output, shape index: {1}]   ;;  %s3013_s17 = inlined_call_operand.hbm [shape: f32[1,1], index: 17, kind: output, shape index: {2}]   ;;  %s3014_s18 = inlined_call_operand.hbm [shape: f32[1,1], index: 18, kind: output, shape index: {3}]  }
   0x1   :  { %3017 = sst [smem:[#allocation20_spill]] %s2996_s0  ;;  %v24_v0 = vstv %s3010_s14 }
   0x2   :  { %3018 = sst [smem:[#allocation21_spill]] %s2997_s1  ;;  %25 = vst [vmem:[#allocation2] sm:$0x1] %v24_v0 }
   0x3   :  { %3019 = sst [smem:[#allocation22_spill]] %s2998_s2 }
   0x4   :  { %26 = vsyncpa [#allocation4], 0 }
   0x5   :  { %27 = vsyncpa [#allocation7], 0 }
   0x6   :  { %28 = vsyncpa [#allocation10], 0 }
   0x7   :  { %29 = vsyncpa [#allocation5], 0  ;;  %s65_s0 = sshll.u32 %s3005_s9, 4  ;;  %s66_s0 = int_to_ptr.hbm [resolvable:$true] %s65_s0 }
   0x8   :  { %30 = vsyncpa [#allocation13], 0  ;;  %s2322_s19 = smov [#allocation6]   ;;  %s3020_s22 = sld [smem:[#allocation22_spill]] }
   0x9   :  { %s67_s1 = sshll.u32 %s2322_s19, 4  ;;  %s2323_s14 = smov [#allocation3]   ;;  %s68_s1 = int_to_ptr.vmem [resolvable:$true] %s67_s1 }
   0xa   :  { %70 = dma.hbm_to_vmem [thread:$0]  %s66_s0, 128, %s68_s1, [#allocation7]  }
   0xb   :  { %s41_s23 = sshll.u32 %s2323_s14, 4  ;;  %s2324_s24 = smov 64   ;;  %s42_s23 = int_to_ptr.vmem [resolvable:$true] %s41_s23 }
   0xc   :  { %s2325_s25 = smov 4   ;;  %s76_s27 = sshll.u32 %s3006_s10, 4  ;;  %s77_s27 = int_to_ptr.hbm [resolvable:$true] %s76_s27 }
   0xd   :  { %s2326_s28 = smov [#allocation8]   ;;  %s86_s19 = sshll.u32 %s3007_s11, 4  ;;  %s87_s19 = int_to_ptr.hbm [resolvable:$true] %s86_s19 }
   0xe   :  { %s39_s2 = sshll.u32 %s3020_s22, 4  ;;  %s78_s29 = sshll.u32 %s2326_s28, 4  ;;  %s40_s2 = int_to_ptr.hbm [resolvable:$true] %s39_s2  ;;  %s79_s29 = int_to_ptr.vmem [resolvable:$true] %s78_s29 }
   0xf   :  { %47 = dma.hbm_to_vmem [thread:$0]  %s40_s2, 512, %s42_s23, [#allocation4], %s2324_s24, %s2324_s24, %s2325_s25  }
  0x10   :  { %81 = dma.hbm_to_vmem [thread:$0]  %s77_s27, 128, %s79_s29, [#allocation7]  }
  0x11   :  { %s2327_s1 = smov [#allocation9]   ;;  %s2328_s21 = smov 128  }
  0x12   :  { %s88_s20 = sshll.u32 %s2327_s1, 4  ;;  %s2329_s22 = smov 8   ;;  %s89_s20 = int_to_ptr.vmem [resolvable:$true] %s88_s20 }
  0x13   :  { %94 = dma.hbm_to_vmem [thread:$0]  %s87_s19, 512, %s89_s20, [#allocation10], %s2328_s21, %s2328_s21, %s2329_s22  }
  0x14   :  { %2312 = dma.done.wait [#allocation4], 512  }
  0x15   :  { %2313 = vsyncadd [#allocation4], 4294966784 }
  0x16   :  { %2314 = dma.done.wait [#allocation7], 256  }
  0x17   :  { %2315 = vsyncadd [#allocation7], 4294967040 }
  0x18   :  { %2316 = dma.done.wait [#allocation10], 512  }
  0x19   :  { %2317 = vsyncadd [#allocation10], 4294966784  ;;  %vm137_vm0 = vcmask 64512   ;;  %v2451_v1 = vld [vmem:[%s3001_s5] sm:$0xff]  ;;  %v2458_v3 = vld [vmem:[%s3003_s7 + $0x18] sm:$0xff]  ;;  %vm169_vm1 = vcmask 261120  }
  0x1a   :  { %v133_v2 = vld [vmem:[#allocation3] sm:$0xf]  ;;  %156 = vmatpush.msra.mxu0 %v2451_v1  ;;  %v2460_v4 = vld [vmem:[#allocation9 + $0x18] sm:$0xff]  ;;  %185 = vmatpush.msra.mxu1 %v2458_v3  ;;  %v2476_v8 = vld [vmem:[#allocation9 + $0x8] sm:$0xff]  ;;  %s3021_s19 = sld [smem:[#allocation21_spill]]  ;;  %vm200_vm2 = vcmask 60416  }
  0x1b   :  { %1913 = vmatmul.msk.f32.vlgmr.msra.gmra.mxu0 %vm137_vm0, %v133_v2  ;;  %v2465_v5 = vld [vmem:[%s3003_s7 + $0x10] sm:$0xff]  ;;  %v2469_v6 = vld [vmem:[#allocation9 + $0x10] sm:$0xff]  ;;  %v2494_v11 = vld [vmem:[%s3002_s6] ss:$0 sm:$0xff]  ;;  %s3022_s10 = sld [smem:[#allocation20_spill]]  ;;  %s2330_s14 = smov 32  }
  0x1c   :  { %285 = vmatpush.msrb.mxu0 %v2460_v4  ;;  %v2474_v7 = vld [vmem:[%s3003_s7 + $0x8] sm:$0xff]  ;;  %186 = vmatpush.msra.mxu1 %v2465_v5  ;;  %v2483_v9 = vld [vmem:[%s3003_s7] sm:$0xff]  ;;  %v2485_v10 = vld [vmem:[#allocation9] sm:$0xff]  ;;  %s2331_s23 = smov 96   ;;  %s2332_s29 = smov [#allocation12]  }
  0x1d   :  { %v2499_v19 = vld [vmem:[#allocation8] sm:$0xff]  ;;  %v2501_v20 = vld [vmem:[#allocation6] sm:$0xff]  ;;  %v2528_v22 = vld [vmem:[%s3004_s8] ss:$0 sm:$0xff]  ;;  %s1877_s30 = sshll.u32 %s2332_s29, 4  ;;  %s1890_s22 = sshll.u32 %s3014_s18, 4  ;;  %s1878_s30 = int_to_ptr.vmem [resolvable:$true] %s1877_s30  ;;  %s1891_s22 = int_to_ptr.hbm [resolvable:$true] %s1890_s22 }
  0x1e   :  { %286 = vmatpush.msrb.mxu0 %v2469_v6  ;;  %187 = vmatpush.msra.mxu1 %v2474_v7  ;;  %v341_v31 = vld [vmem:[#allocation3 + $0x4] sm:$0xf]  ;;  %v2550_v35 = vld [vmem:[%s3008_s12] ss:$0 sm:$0xff] }
  0x1f   :  { %245 = vmatpush.msra.mxu2 %v2499_v19  ;;  %268 = vmatpush.msra.mxu3 %v2501_v20 }
  0x20   :  { %287 = vmatpush.msrb.mxu0 %v2476_v8  ;;  %188 = vmatpush.msra.mxu1 %v2483_v9  ;;  %v132_v21 = vld [vmem:[%s3021_s19] sm:$0xf] }
  0x21   :  { %1915 = vmatmul.msk.f32.vlgmr.msra.gmra.mxu2 %vm137_vm0, %v132_v21  ;;  %391 = vmatpush.msrb.mxu3 %v2458_v3  ;;  %v2533_v23 = vld [vmem:[%s3022_s10] sm:$0xf]  ;;  %v194_v24 = vsub.f32 1.0, %v132_v21 }
  0x22   :  { %288 = vmatpush.msrb.mxu0 %v2485_v10  ;;  %360 = vmatpush.msrb.mxu2 %v2451_v1  ;;  %v193_v27 = vmul.f32 %v132_v21, %v2533_v23 }
  0x23   :  { %450 = vmatpush.msrb.mxu1 %v2499_v19  ;;  %392 = vmatpush.msrb.mxu3 %v2465_v5 }
  0x24   :  { %490 = vmatpush.msra.mxu2 %v2460_v4  ;;  %473 = vmatpush.msra.mxu0 %v2501_v20 }
  0x25   :  { %393 = vmatpush.msrb.mxu3 %v2474_v7 }
  0x26   :  { %491 = vmatpush.msra.mxu2 %v2469_v6 }
  0x27   :  { %394 = vmatpush.msrb.mxu3 %v2483_v9 }
  0x28   :  { %492 = vmatpush.msra.mxu2 %v2476_v8 }
  0x29   :  { %1921 = vmatmul.msk.f32.vlgmr.msrb.gmra.mxu2 %vm137_vm0, %v341_v31 }
  0x2a   :  { %493 = vmatpush.msra.mxu2 %v2485_v10 }
  0x2c   :  { %676 = vmatpush.msrb.mxu2 %v2501_v20 }
  0x98   :  { %v158_v12 = vpop.f32.mrf.mxu0 }
  0x99   :  { %v159_v13 = vadd.f32 %v2494_v11, %v158_v12 }
  0x9b   :  { %v161_v14 = vmax.f32 %v159_v13, 0.0 }
  0x9d   :  { %v162_v15 = vsub.f32 0.0, %v161_v14 }
  0x9f   :  { %v163_v16 = vmul.f32 1.442695, %v162_v15  ;;  %v1920_v15 = vld [vmem:[%s3021_s19 + $0x4] sm:$0xf] }
  0xa1   :  { %2030 = vpow2.f32 %v163_v16 }
  0xa4   :  { %v247_v32 = vpop.f32.mrf.mxu2 }
  0xa7   :  { %v2031_v17 = vpop.eup %2030 }
  0xa8   :  { %v165_v18 = vmul.f32 0.0, %v2031_v17  ;;  %v2577_v17 = vld [vmem:[%s3022_s10 + $0x4] sm:$0xf] }
  0xaa   :  { %1914 = vmatmul.msk.f32.vlgmr.msra.gmra.mxu1 %vm169_vm1, %v165_v18  ;;  %1917 = vmatmul.msk.f32.vlgmr.msrb.gmra.mxu0 %vm169_vm1, %v165_v18  ;;  %v400_v18 = vsub.f32 1.0, %v1920_v15 }
  0xab   :  { %594 = vmatpush.msra.mxu1 %v2458_v3  ;;  %653 = vmatpush.msrb.mxu0 %v2499_v19 }
  0xac   :  { %v362_v55 = vpop.f32.mrf.mxu2 }
  0xad   :  { %595 = vmatpush.msra.mxu1 %v2465_v5  ;;  %v363_v56 = vadd.f32 %v2494_v11, %v362_v55 }
  0xaf   :  { %596 = vmatpush.msra.mxu1 %v2474_v7  ;;  %v365_v57 = vmax.f32 %v363_v56, 0.0 }
  0xb1   :  { %597 = vmatpush.msra.mxu1 %v2483_v9  ;;  %v366_v61 = vsub.f32 0.0, %v365_v57 }
  0xb2   :  { %1923 = vmatmul.msk.f32.vlgmr.msrb.gmra.mxu1 %vm137_vm0, %v1920_v15 }
  0xb3   :  { %v367_v62 = vmul.f32 1.442695, %v366_v61  ;;  %766 = vmatpush.msrb.mxu1 %v2451_v1 }
 0x127   :  { %v190_v25 = vpop.f32.mrf.mxu1  ;;  %v290_v36 = vpop.f32.mrf.mxu0 }
 0x128   :  { %v2536_v26 = vadd.f32 %v2528_v22, %v190_v25  ;;  %v399_v25 = vmul.f32 %v1920_v15, %v2577_v17 }
 0x12a   :  { %v195_v28 = vmul.f32 %v194_v24, %v2536_v26  ;;  %v197_v29 = vsub.f32 %v2533_v23, %v2536_v26 }
 0x12c   :  { %v196_v30 = vadd.f32 %v195_v28, %v193_v27 }
 0x12e   :  { %1916 = vmatmul.msk.f32.vlgmr.msra.gmra.mxu3 %vm137_vm0, %v196_v30  ;;  %335 = vst.msk [vmem:[#allocation11] sm:$0xf] %vm200_vm2, %v196_v30 }
 0x12f   :  { %563 = vmatpush.msra.mxu3 %v2451_v1  ;;  %v452_v31 = vpop.f32.mrf.mxu1 }
 0x1b1   :  { %v270_v33 = vpop.f32.mrf.mxu3 }
 0x1b2   :  { %v271_v34 = vadd.f32 %v270_v33, %v247_v32 }
 0x1b4   :  { %v293_v37 = vadd.f32 %v290_v36, %v271_v34 }
 0x1b6   :  { %v297_v38 = vadd.f32 %v2550_v35, %v293_v37 }
 0x1b8   :  { %2032 = vtanh.f32 %v297_v38  ;;  %v1918_v40 = vmul.f32 -1.442695, %v297_v38 }
 0x1ba   :  { %2034 = vpow2.f32 %v1918_v40 }
 0x1be   :  { %v2033_v39 = vpop.eup %2032 }
 0x1bf   :  { %320 = vrot.lane.b32.xlu0 %v2033_v39, %s2324_s24 }
 0x1c0   :  { %v2035_v41 = vpop.eup %2034 }
 0x1c1   :  { %v301_v42 = vadd.f32 1.0, %v2035_v41 }
 0x1c3   :  { %2036 = vrcp.f32 %v301_v42  ;;  %v313_v48 = vand.u32 2147483648, %v301_v42  ;;  %vm307_vm4 = vweird.f32 %v301_v42  ;;  %v311_v49 = vand.u32 2147483647, %v301_v42 }
 0x1c5   :  { %v314_v51 = vor.u32 1.1754944e-38, %v313_v48  ;;  %vm312_vm6 = vcmp.eq.f32.partialorder %v311_v49, 8.507059e+37 }
 0x1c9   :  { %v2037_v43 = vpop.eup %2036 }
 0x1ca   :  { %v303_v44 = vmul.f32 %v2037_v43, %v301_v42  ;;  %vm308_vm3 = vweird.f32 %v2037_v43  ;;  %v544_v42 = vld [vmem:[#allocation3 + $0x8] sm:$0xf] }
 0x1cb   :  { %vm309_vm5 = vmor %vm307_vm4, %vm308_vm3 }
 0x1cc   :  { %v304_v45 = vsub.f32 1.0, %v303_v44 }
 0x1ce   :  { %v305_v46 = vmul.f32 %v2037_v43, %v304_v45 }
 0x1d0   :  { %v306_v47 = vadd.f32 %v2037_v43, %v305_v46 }
 0x1d2   :  { %v310_v50 = vsel %vm309_vm5, %v2037_v43, %v306_v47 }
 0x1d3   :  { %v315_v53 = vsel %vm312_vm6, %v314_v51, %v310_v50 }
 0x1d4   :  { %v318_v58 = vmul.f32 0.0, %v315_v53 }
 0x231   :  { %v321_v52 = vpop.permute.xlu0 %320 }
 0x232   :  { %v323_v54 = vmul.f32 %v321_v52, %v315_v53 }
 0x234   :  { %325 = vrot.lane.b32.xlu0 %v323_v54, %s2330_s14 }
 0x2a6   :  { %v326_v59 = vpop.permute.xlu0 %325 }
 0x2a7   :  { %v2556_v60 = vadd.f32 %v326_v59, %v318_v58 }
 0x2a9   :  { %2038 = vtanh.f32 %v2556_v60 }
 0x2aa   :  { %2040 = vpow2.f32 %v367_v62 }
 0x2af   :  { %v2039_v63 = vpop.eup %2038 }
 0x2b0   :  { %331 = vrot.lane.b32.xlu1 %v2039_v63, %s2324_s24  ;;  %v2041_v0 = vpop.eup %2040 }
 0x2b8   :  { %370 = vrot.lane.b32.xlu1 %v2041_v0, %s2331_s23 }
 0x322   :  { %v332_v2 = vpop.permute.xlu1 %331 }
 0x323   :  { %v334_v12 = vmul.f32 %v332_v2, %v315_v53 }
 0x32a   :  { %v371_v13 = vpop.permute.xlu1 %370 }
 0x32b   :  { %v373_v14 = vmul.f32 %v371_v13, %v334_v12 }
 0x32d   :  { %375 = vrot.lane.b32.xlu2 %v373_v14, %s2330_s14 }
 0x387   :  { %v376_v16 = vpop.permute.xlu2 %375 }
 0x388   :  { %1922 = vmatmul.msk.f32.vlgmr.msrb.gmra.mxu3 %vm169_vm1, %v376_v16  ;;  %1925 = vmatmul.msk.f32.vlgmr.msra.gmra.mxu2 %vm169_vm1, %v376_v16 }
 0x389   :  { %693 = vmatpush.msrb.mxu3 %v2460_v4  ;;  %856 = vmatpush.msra.mxu2 %v2499_v19 }
 0x38b   :  { %694 = vmatpush.msrb.mxu3 %v2469_v6 }
 0x38d   :  { %695 = vmatpush.msrb.mxu3 %v2476_v8 }
 0x38f   :  { %696 = vmatpush.msrb.mxu3 %v2485_v10 }
 0x390   :  { %1929 = vmatmul.msk.f32.vlgmr.msra.gmra.mxu3 %vm137_vm0, %v544_v42 }
 0x391   :  { %879 = vmatpush.msra.mxu3 %v2501_v20 }
 0x40b   :  { %v396_v21 = vpop.f32.mrf.mxu3  ;;  %v495_v34 = vpop.f32.mrf.mxu2 }
 0x40c   :  { %v2580_v24 = vadd.f32 %v2528_v22, %v396_v21 }
 0x40e   :  { %v401_v27 = vmul.f32 %v400_v18, %v2580_v24  ;;  %v403_v28 = vsub.f32 %v2577_v17, %v2580_v24  ;;  %v2623_v18 = vld [vmem:[%s3022_s10 + $0x8] sm:$0xf] }
 0x410   :  { %v402_v30 = vadd.f32 %v401_v27, %v399_v25 }
 0x412   :  { %538 = vst.msk [vmem:[#allocation11 + $0x4] sm:$0xf] %vm200_vm2, %v402_v30  ;;  %1924 = vmatmul.msk.f32.vlgmr.msra.gmra.mxu0 %vm137_vm0, %v402_v30 }
 0x413   :  { %797 = vmatpush.msra.mxu0 %v2458_v3  ;;  %v565_v55 = vpop.f32.mrf.mxu3 }
 0x414   :  { %v566_v56 = vadd.f32 %v2494_v11, %v565_v55 }
 0x415   :  { %798 = vmatpush.msra.mxu0 %v2465_v5 }
 0x416   :  { %v568_v57 = vmax.f32 %v566_v56, 0.0 }
 0x417   :  { %799 = vmatpush.msra.mxu0 %v2474_v7 }
 0x418   :  { %v569_v58 = vsub.f32 0.0, %v568_v57 }
 0x419   :  { %800 = vmatpush.msra.mxu0 %v2483_v9 }
 0x41a   :  { %v570_v59 = vmul.f32 1.442695, %v569_v58 }
 0x48f   :  { %v475_v32 = vpop.f32.mrf.mxu0 }
 0x490   :  { %v476_v33 = vadd.f32 %v475_v32, %v452_v31 }
 0x492   :  { %v498_v36 = vadd.f32 %v495_v34, %v476_v33  ;;  %v747_v34 = vld [vmem:[#allocation3 + $0xc] sm:$0xf] }
 0x494   :  { %v499_v37 = vadd.f32 %v2550_v35, %v498_v36 }
 0x496   :  { %2042 = vtanh.f32 %v499_v37  ;;  %v1926_v39 = vmul.f32 -1.442695, %v499_v37 }
 0x498   :  { %2044 = vpow2.f32 %v1926_v39 }
 0x49c   :  { %v2043_v38 = vpop.eup %2042 }
 0x49d   :  { %522 = vrot.lane.b32.xlu2 %v2043_v38, %s2324_s24 }
 0x49e   :  { %v2045_v40 = vpop.eup %2044 }
 0x49f   :  { %v503_v41 = vadd.f32 1.0, %v2045_v40 }
 0x4a1   :  { %2046 = vrcp.f32 %v503_v41  ;;  %v515_v48 = vand.u32 2147483648, %v503_v41  ;;  %vm509_vm8 = vweird.f32 %v503_v41  ;;  %v513_v49 = vand.u32 2147483647, %v503_v41 }
 0x4a2   :  { %2048 = vpow2.f32 %v570_v59 }
 0x4a3   :  { %v516_v51 = vor.u32 1.1754944e-38, %v515_v48  ;;  %vm514_vm10 = vcmp.eq.f32.partialorder %v513_v49, 8.507059e+37 }
 0x4a7   :  { %v2047_v43 = vpop.eup %2046 }
 0x4a8   :  { %v505_v44 = vmul.f32 %v2047_v43, %v503_v41  ;;  %vm510_vm7 = vweird.f32 %v2047_v43  ;;  %v2049_v63 = vpop.eup %2048 }
 0x4a9   :  { %vm511_vm9 = vmor %vm509_vm8, %vm510_vm7  ;;  %573 = vrot.lane.b32.xlu2 %v2049_v63, %s2331_s23 }
 0x4aa   :  { %v506_v45 = vsub.f32 1.0, %v505_v44 }
 0x4ac   :  { %v507_v46 = vmul.f32 %v2047_v43, %v506_v45 }
 0x4ae   :  { %v508_v47 = vadd.f32 %v2047_v43, %v507_v46 }
 0x4b0   :  { %v512_v50 = vsel %vm511_vm9, %v2047_v43, %v508_v47 }
 0x4b1   :  { %v517_v53 = vsel %vm514_vm10, %v516_v51, %v512_v50 }
 0x4b2   :  { %v520_v61 = vmul.f32 %v517_v53, %v2556_v60  ;;  %v2608_v60 = vld [vmem:[%s3021_s19 + $0x8] sm:$0xf] }
 0x4b3   :  { %1931 = vmatmul.msk.f32.vlgmr.msrb.gmra.mxu0 %vm137_vm0, %v2608_v60  ;;  %v603_v21 = vsub.f32 1.0, %v2608_v60  ;;  %v602_v30 = vmul.f32 %v2608_v60, %v2623_v18 }
 0x4b4   :  { %969 = vmatpush.msrb.mxu0 %v2451_v1 }
 0x4f7   :  { %v523_v52 = vpop.permute.xlu2 %522 }
 0x4f8   :  { %v525_v54 = vmul.f32 %v523_v52, %v517_v53 }
 0x4fa   :  { %527 = vrot.lane.b32.xlu0 %v525_v54, %s2330_s14 }
 0x503   :  { %v574_v13 = vpop.permute.xlu2 %573 }
 0x530   :  { %v655_v36 = vpop.f32.mrf.mxu0 }
 0x56c   :  { %v528_v62 = vpop.permute.xlu0 %527 }
 0x56d   :  { %v2599_v0 = vadd.f32 %v528_v62, %v520_v61 }
 0x56f   :  { %2050 = vtanh.f32 %v2599_v0 }
 0x575   :  { %v2051_v2 = vpop.eup %2050 }
 0x576   :  { %533 = vrot.lane.b32.xlu1 %v2051_v2, %s2324_s24 }
 0x5e8   :  { %v534_v12 = vpop.permute.xlu1 %533 }
 0x5e9   :  { %v536_v14 = vmul.f32 %v534_v12, %v517_v53 }
 0x5eb   :  { %v576_v15 = vmul.f32 %v574_v13, %v536_v14 }
 0x5ed   :  { %578 = vrot.lane.b32.xlu0 %v576_v15, %s2330_s14 }
 0x65f   :  { %v579_v16 = vpop.permute.xlu0 %578 }
 0x660   :  { %1930 = vmatmul.msk.f32.vlgmr.msra.gmra.mxu1 %vm169_vm1, %v579_v16  ;;  %1933 = vmatmul.msk.f32.vlgmr.msrb.gmra.mxu3 %vm169_vm1, %v579_v16 }
 0x661   :  { %896 = vmatpush.msra.mxu1 %v2460_v4  ;;  %1059 = vmatpush.msrb.mxu3 %v2499_v19 }
 0x663   :  { %897 = vmatpush.msra.mxu1 %v2469_v6 }
 0x665   :  { %898 = vmatpush.msra.mxu1 %v2476_v8 }
 0x667   :  { %899 = vmatpush.msra.mxu1 %v2485_v10 }
 0x668   :  { %1937 = vmatmul.msk.f32.vlgmr.msrb.gmra.mxu1 %vm137_vm0, %v747_v34 }
 0x669   :  { %1082 = vmatpush.msrb.mxu1 %v2501_v20 }
 0x6dd   :  { %v599_v25 = vpop.f32.mrf.mxu1 }
 0x6de   :  { %v2627_v27 = vadd.f32 %v2528_v22, %v599_v25 }
 0x6e0   :  { %v604_v31 = vmul.f32 %v603_v21, %v2627_v27  ;;  %v606_v32 = vsub.f32 %v2623_v18, %v2627_v27 }
 0x6e2   :  { %v605_v33 = vadd.f32 %v604_v31, %v602_v30  ;;  %v2656_v31 = vld [vmem:[%s3021_s19 + $0xc] sm:$0xf] }
 0x6e3   :  { %v698_v39 = vpop.f32.mrf.mxu3  ;;  %v806_v34 = vsub.f32 1.0, %v2656_v31  ;;  %v823_v23 = vsel %vm200_vm2, %v2656_v31, 0.0 }
 0x6e4   :  { %741 = vst.msk [vmem:[#allocation11 + $0x8] sm:$0xf] %vm200_vm2, %v605_v33  ;;  %1932 = vmatmul.msk.f32.vlgmr.msrb.gmra.mxu2 %vm137_vm0, %v605_v33  ;;  %v2671_v33 = vld [vmem:[%s3022_s10 + $0xc] sm:$0xf] }
 0x6e5   :  { %1000 = vmatpush.msrb.mxu2 %v2458_v3  ;;  %v768_v48 = vpop.f32.mrf.mxu1 }
 0x6e6   :  { %v769_v50 = vadd.f32 %v2494_v11, %v768_v48 }
 0x6e7   :  { %1001 = vmatpush.msrb.mxu2 %v2465_v5 }
 0x6e8   :  { %v771_v51 = vmax.f32 %v769_v50, 0.0 }
 0x6e9   :  { %1002 = vmatpush.msrb.mxu2 %v2474_v7 }
 0x6ea   :  { %v772_v53 = vsub.f32 0.0, %v771_v51 }
 0x6eb   :  { %1003 = vmatpush.msrb.mxu2 %v2483_v9 }
 0x6ec   :  { %v773_v54 = vmul.f32 1.442695, %v772_v53  ;;  %1939 = vmatmul.msk.f32.vlgmr.msra.gmra.mxu2 %vm137_vm0, %v2656_v31 }
 0x6ed   :  { %1172 = vmatpush.msra.mxu2 %v2451_v1 }
 0x767   :  { %v678_v37 = vpop.f32.mrf.mxu2 }
 0x768   :  { %v679_v38 = vadd.f32 %v678_v37, %v655_v36 }
 0x76a   :  { %v701_v40 = vadd.f32 %v698_v39, %v679_v38  ;;  %v805_v38 = vmul.f32 %v2656_v31, %v2671_v33 }
 0x76c   :  { %v702_v41 = vadd.f32 %v2550_v35, %v701_v40 }
 0x76e   :  { %2052 = vtanh.f32 %v702_v41  ;;  %v1934_v43 = vmul.f32 -1.442695, %v702_v41 }
 0x770   :  { %2054 = vpow2.f32 %v1934_v43  ;;  %v858_v43 = vpop.f32.mrf.mxu2 }
 0x774   :  { %v2053_v42 = vpop.eup %2052 }
 0x775   :  { %725 = vrot.lane.b32.xlu1 %v2053_v42, %s2324_s24  ;;  %v950_v42 = vld [vmem:[#allocation3 + $0x10] sm:$0xf] }
 0x776   :  { %v2055_v44 = vpop.eup %2054 }
 0x777   :  { %v706_v45 = vadd.f32 1.0, %v2055_v44 }
 0x779   :  { %2056 = vrcp.f32 %v706_v45  ;;  %v718_v56 = vand.u32 2147483648, %v706_v45  ;;  %vm712_vm12 = vweird.f32 %v706_v45  ;;  %v716_v57 = vand.u32 2147483647, %v706_v45 }
 0x77a   :  { %2058 = vpow2.f32 %v773_v54 }
 0x77b   :  { %v719_v59 = vor.u32 1.1754944e-38, %v718_v56  ;;  %vm717_vm14 = vcmp.eq.f32.partialorder %v716_v57, 8.507059e+37 }
 0x77f   :  { %v2057_v46 = vpop.eup %2056 }
 0x780   :  { %v708_v47 = vmul.f32 %v2057_v46, %v706_v45  ;;  %vm713_vm11 = vweird.f32 %v2057_v46  ;;  %v2059_v61 = vpop.eup %2058 }
 0x781   :  { %vm714_vm13 = vmor %vm712_vm12, %vm713_vm11  ;;  %776 = vrot.lane.b32.xlu1 %v2059_v61, %s2331_s23 }
 0x782   :  { %v709_v49 = vsub.f32 1.0, %v708_v47 }
 0x784   :  { %v710_v52 = vmul.f32 %v2057_v46, %v709_v49 }
 0x786   :  { %v711_v55 = vadd.f32 %v2057_v46, %v710_v52 }
 0x788   :  { %v715_v58 = vsel %vm714_vm13, %v2057_v46, %v711_v55 }
 0x789   :  { %v720_v63 = vsel %vm717_vm14, %v719_v59, %v715_v58 }
 0x78a   :  { %v723_v12 = vmul.f32 %v720_v63, %v2599_v0 }
 0x7e7   :  { %v726_v62 = vpop.permute.xlu1 %725 }
 0x7e8   :  { %v728_v2 = vmul.f32 %v726_v62, %v720_v63 }
 0x7ea   :  { %730 = vrot.lane.b32.xlu2 %v728_v2, %s2330_s14 }
 0x7f3   :  { %v777_v21 = vpop.permute.xlu1 %776 }
 0x844   :  { %v731_v13 = vpop.permute.xlu2 %730 }
 0x845   :  { %v2648_v14 = vadd.f32 %v731_v13, %v723_v12 }
 0x847   :  { %2060 = vtanh.f32 %v2648_v14 }
 0x84d   :  { %v2061_v15 = vpop.eup %2060 }
 0x84e   :  { %736 = vrot.lane.b32.xlu0 %v2061_v15, %s2324_s24 }
 0x8c0   :  { %v737_v16 = vpop.permute.xlu0 %736 }
 0x8c1   :  { %v739_v25 = vmul.f32 %v737_v16, %v720_v63 }
 0x8c3   :  { %v779_v30 = vmul.f32 %v777_v21, %v739_v25 }
 0x8c5   :  { %781 = vrot.lane.b32.xlu2 %v779_v30, %s2330_s14 }
 0x91f   :  { %v782_v0 = vpop.permute.xlu2 %781 }
 0x920   :  { %1938 = vmatmul.msk.f32.vlgmr.msra.gmra.mxu0 %vm169_vm1, %v782_v0  ;;  %1941 = vmatmul.msk.f32.vlgmr.msra.gmra.mxu1 %vm169_vm1, %v782_v0 }
 0x921   :  { %1099 = vmatpush.msra.mxu0 %v2460_v4  ;;  %1262 = vmatpush.msra.mxu1 %v2499_v19 }
 0x923   :  { %1100 = vmatpush.msra.mxu0 %v2469_v6 }
 0x925   :  { %1101 = vmatpush.msra.mxu0 %v2476_v8 }
 0x927   :  { %1102 = vmatpush.msra.mxu0 %v2485_v10 }
 0x928   :  { %1945 = vmatmul.msk.f32.vlgmr.msrb.gmra.mxu0 %vm137_vm0, %v950_v42 }
 0x929   :  { %1285 = vmatpush.msrb.mxu0 %v2501_v20 }
 0x99d   :  { %v802_v36 = vpop.f32.mrf.mxu0  ;;  %v901_v46 = vpop.f32.mrf.mxu1 }
 0x99e   :  { %v2675_v37 = vadd.f32 %v2528_v22, %v802_v36 }
 0x9a0   :  { %v807_v39 = vmul.f32 %v806_v34, %v2675_v37  ;;  %v809_v40 = vsub.f32 %v2671_v33, %v2675_v37  ;;  %v1759_v33 = vld [vmem:[%s3009_s13] sm:$0xff] }
 0x9a2   :  { %v808_v41 = vadd.f32 %v807_v39, %v805_v38  ;;  %v810_v24 = vand.u32 2147483647, %v809_v40 }
 0x9a4   :  { %944 = vst.msk [vmem:[#allocation11 + $0xc] sm:$0xf] %vm200_vm2, %v808_v41  ;;  %1940 = vmatmul.msk.f32.vlgmr.msra.gmra.mxu3 %vm137_vm0, %v808_v41 }
 0x9a5   :  { %1203 = vmatpush.msra.mxu3 %v2458_v3  ;;  %v971_v55 = vpop.f32.mrf.mxu0 }
 0x9a6   :  { %v972_v57 = vadd.f32 %v2494_v11, %v971_v55 }
 0x9a7   :  { %1204 = vmatpush.msra.mxu3 %v2465_v5 }
 0x9a8   :  { %v974_v58 = vmax.f32 %v972_v57, 0.0 }
 0x9a9   :  { %1205 = vmatpush.msra.mxu3 %v2474_v7 }
 0x9aa   :  { %v975_v61 = vsub.f32 0.0, %v974_v58 }
 0x9ab   :  { %1206 = vmatpush.msra.mxu3 %v2483_v9 }
 0x9ac   :  { %v976_v62 = vmul.f32 1.442695, %v975_v61 }
 0xa27   :  { %v881_v44 = vpop.f32.mrf.mxu3 }
 0xa28   :  { %v882_v45 = vadd.f32 %v881_v44, %v858_v43 }
 0xa2a   :  { %v904_v47 = vadd.f32 %v901_v46, %v882_v45  ;;  %v2719_v45 = vld [vmem:[%s3022_s10 + $0x10] sm:$0xf] }
 0xa2c   :  { %v905_v48 = vadd.f32 %v2550_v35, %v904_v47 }
 0xa2e   :  { %2062 = vtanh.f32 %v905_v48  ;;  %v1942_v50 = vmul.f32 -1.442695, %v905_v48 }
 0xa30   :  { %2064 = vpow2.f32 %v1942_v50 }
 0xa34   :  { %v2063_v49 = vpop.eup %2062 }
 0xa35   :  { %928 = vrot.lane.b32.xlu0 %v2063_v49, %s2324_s24 }
 0xa36   :  { %v2065_v51 = vpop.eup %2064 }
 0xa37   :  { %v909_v52 = vadd.f32 1.0, %v2065_v51 }
 0xa39   :  { %2066 = vrcp.f32 %v909_v52  ;;  %v921_v2 = vand.u32 2147483648, %v909_v52  ;;  %vm915_vm3 = vweird.f32 %v909_v52  ;;  %v919_v12 = vand.u32 2147483647, %v909_v52 }
 0xa3a   :  { %2068 = vpow2.f32 %v976_v62 }
 0xa3b   :  { %v922_v15 = vor.u32 1.1754944e-38, %v921_v2  ;;  %vm920_vm5 = vcmp.eq.f32.partialorder %v919_v12, 8.507059e+37  ;;  %v1153_v2 = vld [vmem:[#allocation3 + $0x14] sm:$0xf] }
 0xa3f   :  { %v2067_v53 = vpop.eup %2066 }
 0xa40   :  { %v911_v54 = vmul.f32 %v2067_v53, %v909_v52  ;;  %vm916_vm15 = vweird.f32 %v2067_v53  ;;  %v2069_v16 = vpop.eup %2068 }
 0xa41   :  { %vm917_vm4 = vmor %vm915_vm3, %vm916_vm15  ;;  %979 = vrot.lane.b32.xlu0 %v2069_v16, %s2331_s23 }
 0xa42   :  { %v912_v56 = vsub.f32 1.0, %v911_v54 }
 0xa44   :  { %v913_v59 = vmul.f32 %v2067_v53, %v912_v56 }
 0xa46   :  { %v914_v63 = vadd.f32 %v2067_v53, %v913_v59 }
 0xa48   :  { %v918_v13 = vsel %vm917_vm4, %v2067_v53, %v914_v63 }
 0xa49   :  { %v923_v25 = vsel %vm920_vm5, %v922_v15, %v918_v13 }
 0xa4a   :  { %v926_v0 = vmul.f32 %v923_v25, %v2648_v14  ;;  %v2711_v14 = vld [vmem:[%s3021_s19 + $0x10] sm:$0xf] }
 0xa4b   :  { %1947 = vmatmul.msk.f32.vlgmr.msrb.gmra.mxu3 %vm137_vm0, %v2711_v14  ;;  %v1009_v46 = vsub.f32 1.0, %v2711_v14  ;;  %v1008_v49 = vmul.f32 %v2711_v14, %v2719_v45  ;;  %v1026_v40 = vsel %vm200_vm2, %v2711_v14, 0.0 }
 0xa4c   :  { %1375 = vmatpush.msrb.mxu3 %v2451_v1 }
 0xaa7   :  { %v929_v21 = vpop.permute.xlu0 %928 }
 0xaa8   :  { %v931_v30 = vmul.f32 %v929_v21, %v923_v25 }
 0xaaa   :  { %933 = vrot.lane.b32.xlu1 %v931_v30, %s2330_s14 }
 0xab3   :  { %v980_v41 = vpop.permute.xlu0 %979 }
 0xace   :  { %v1061_v53 = vpop.f32.mrf.mxu3 }
 0xb1c   :  { %v934_v34 = vpop.permute.xlu1 %933 }
 0xb1d   :  { %v2696_v36 = vadd.f32 %v934_v34, %v926_v0 }
 0xb1f   :  { %2070 = vtanh.f32 %v2696_v36 }
 0xb25   :  { %v2071_v38 = vpop.eup %2070 }
 0xb26   :  { %939 = vrot.lane.b32.xlu2 %v2071_v38, %s2324_s24 }
 0xb80   :  { %v940_v39 = vpop.permute.xlu2 %939 }
 0xb81   :  { %v942_v42 = vmul.f32 %v940_v39, %v923_v25 }
 0xb83   :  { %v982_v43 = vmul.f32 %v980_v41, %v942_v42 }
 0xb85   :  { %984 = vrot.lane.b32.xlu1 %v982_v43, %s2330_s14 }
 0xbf7   :  { %v985_v44 = vpop.permute.xlu1 %984 }
 0xbf8   :  { %1946 = vmatmul.msk.f32.vlgmr.msrb.gmra.mxu2 %vm169_vm1, %v985_v44  ;;  %1949 = vmatmul.msk.f32.vlgmr.msra.gmra.mxu0 %vm169_vm1, %v985_v44 }
 0xbf9   :  { %1302 = vmatpush.msrb.mxu2 %v2460_v4  ;;  %1465 = vmatpush.msra.mxu0 %v2499_v19 }
 0xbfb   :  { %1303 = vmatpush.msrb.mxu2 %v2469_v6 }
 0xbfd   :  { %1304 = vmatpush.msrb.mxu2 %v2476_v8 }
 0xbff   :  { %1305 = vmatpush.msrb.mxu2 %v2485_v10 }
 0xc00   :  { %1953 = vmatmul.msk.f32.vlgmr.msra.gmra.mxu2 %vm137_vm0, %v1153_v2 }
 0xc01   :  { %1488 = vmatpush.msra.mxu2 %v2501_v20 }
 0xc75   :  { %v1104_v56 = vpop.f32.mrf.mxu0 }
 0xc7b   :  { %v1005_v47 = vpop.f32.mrf.mxu2 }
 0xc7c   :  { %v2723_v48 = vadd.f32 %v2528_v22, %v1005_v47 }
 0xc7e   :  { %v1010_v50 = vmul.f32 %v1009_v46, %v2723_v48  ;;  %v1012_v51 = vsub.f32 %v2719_v45, %v2723_v48 }
 0xc80   :  { %v1011_v52 = vadd.f32 %v1010_v50, %v1008_v49 }
 0xc82   :  { %1147 = vst.msk [vmem:[#allocation11 + $0x10] sm:$0xf] %vm200_vm2, %v1011_v52  ;;  %1948 = vmatmul.msk.f32.vlgmr.msrb.gmra.mxu1 %vm137_vm0, %v1011_v52 }
 0xc83   :  { %1406 = vmatpush.msrb.mxu1 %v2458_v3  ;;  %v1174_v42 = vpop.f32.mrf.mxu2 }
 0xc84   :  { %v1175_v43 = vadd.f32 %v2494_v11, %v1174_v42 }
 0xc85   :  { %1407 = vmatpush.msrb.mxu1 %v2465_v5 }
 0xc86   :  { %v1177_v44 = vmax.f32 %v1175_v43, 0.0 }
 0xc87   :  { %1408 = vmatpush.msrb.mxu1 %v2474_v7 }
 0xc88   :  { %v1178_v46 = vsub.f32 0.0, %v1177_v44 }
 0xc89   :  { %1409 = vmatpush.msrb.mxu1 %v2483_v9 }
 0xc8a   :  { %v1179_v47 = vmul.f32 1.442695, %v1178_v46 }
 0xcff   :  { %v1084_v54 = vpop.f32.mrf.mxu1 }
 0xd00   :  { %v1085_v55 = vadd.f32 %v1084_v54, %v1061_v53 }
 0xd02   :  { %v1107_v57 = vadd.f32 %v1104_v56, %v1085_v55 }
 0xd04   :  { %v1108_v58 = vadd.f32 %v2550_v35, %v1107_v57 }
 0xd06   :  { %2072 = vtanh.f32 %v1108_v58  ;;  %v1950_v61 = vmul.f32 -1.442695, %v1108_v58 }
 0xd08   :  { %2074 = vpow2.f32 %v1950_v61  ;;  %v2767_v61 = vld [vmem:[%s3022_s10 + $0x14] sm:$0xf] }
 0xd0c   :  { %v2073_v59 = vpop.eup %2072 }
 0xd0d   :  { %1131 = vrot.lane.b32.xlu2 %v2073_v59, %s2324_s24 }
 0xd0e   :  { %v2075_v62 = vpop.eup %2074 }
 0xd0f   :  { %v1112_v63 = vadd.f32 1.0, %v2075_v62 }
 0xd11   :  { %2076 = vrcp.f32 %v1112_v63  ;;  %v1124_v25 = vand.u32 2147483648, %v1112_v63  ;;  %vm1118_vm7 = vweird.f32 %v1112_v63  ;;  %v1122_v30 = vand.u32 2147483647, %v1112_v63 }
 0xd12   :  { %2078 = vpow2.f32 %v1179_v47 }
 0xd13   :  { %v1125_v34 = vor.u32 1.1754944e-38, %v1124_v25  ;;  %vm1123_vm9 = vcmp.eq.f32.partialorder %v1122_v30, 8.507059e+37 }
 0xd17   :  { %v2077_v12 = vpop.eup %2076 }
 0xd18   :  { %v1114_v13 = vmul.f32 %v2077_v12, %v1112_v63  ;;  %vm1119_vm6 = vweird.f32 %v2077_v12  ;;  %v2079_v52 = vpop.eup %2078 }
 0xd19   :  { %vm1120_vm8 = vmor %vm1118_vm7, %vm1119_vm6  ;;  %1182 = vrot.lane.b32.xlu2 %v2079_v52, %s2331_s23 }
 0xd1a   :  { %v1115_v15 = vsub.f32 1.0, %v1114_v13  ;;  %v1356_v13 = vld [vmem:[#allocation3 + $0x18] sm:$0xf] }
 0xd1c   :  { %v1116_v16 = vmul.f32 %v2077_v12, %v1115_v15 }
 0xd1e   :  { %v1117_v21 = vadd.f32 %v2077_v12, %v1116_v16 }
 0xd20   :  { %v1121_v0 = vsel %vm1120_vm8, %v2077_v12, %v1117_v21 }
 0xd21   :  { %v1126_v39 = vsel %vm1123_vm9, %v1125_v34, %v1121_v0 }
 0xd22   :  { %v1129_v49 = vmul.f32 %v1126_v39, %v2696_v36  ;;  %v2752_v36 = vld [vmem:[%s3021_s19 + $0x14] sm:$0xf] }
 0xd23   :  { %1955 = vmatmul.msk.f32.vlgmr.msra.gmra.mxu1 %vm137_vm0, %v2752_v36 }
 0xd24   :  { %1578 = vmatpush.msra.mxu1 %v2451_v1  ;;  %v1212_v1 = vsub.f32 1.0, %v2752_v36 }
 0xd67   :  { %v1132_v38 = vpop.permute.xlu2 %1131 }
 0xd68   :  { %v1134_v41 = vmul.f32 %v1132_v38, %v1126_v39 }
 0xd6a   :  { %1136 = vrot.lane.b32.xlu0 %v1134_v41, %s2330_s14 }
 0xd73   :  { %v1183_v56 = vpop.permute.xlu2 %1182 }
 0xda0   :  { %v1264_v15 = vpop.f32.mrf.mxu1 }
 0xddc   :  { %v1137_v50 = vpop.permute.xlu0 %1136 }
 0xddd   :  { %v2743_v53 = vadd.f32 %v1137_v50, %v1129_v49 }
 0xddf   :  { %2080 = vtanh.f32 %v2743_v53 }
 0xde5   :  { %v2081_v54 = vpop.eup %2080 }
 0xde6   :  { %1142 = vrot.lane.b32.xlu1 %v2081_v54, %s2324_s24 }
 0xe58   :  { %v1143_v55 = vpop.permute.xlu1 %1142 }
 0xe59   :  { %v1145_v57 = vmul.f32 %v1143_v55, %v1126_v39 }
 0xe5b   :  { %v1185_v58 = vmul.f32 %v1183_v56, %v1145_v57 }
 0xe5d   :  { %1187 = vrot.lane.b32.xlu0 %v1185_v58, %s2330_s14 }
 0xecf   :  { %v1188_v59 = vpop.permute.xlu0 %1187 }
 0xed0   :  { %1954 = vmatmul.msk.f32.vlgmr.msra.gmra.mxu3 %vm169_vm1, %v1188_v59  ;;  %1957 = vmatmul.msk.f32.vlgmr.msrb.gmra.mxu2 %vm169_vm1, %v1188_v59 }
 0xed1   :  { %1505 = vmatpush.msra.mxu3 %v2460_v4  ;;  %1668 = vmatpush.msrb.mxu2 %v2499_v19  ;;  %v1211_v4 = vmul.f32 %v2752_v36, %v2767_v61 }
 0xed3   :  { %1506 = vmatpush.msra.mxu3 %v2469_v6 }
 0xed5   :  { %1507 = vmatpush.msra.mxu3 %v2476_v8 }
 0xed7   :  { %1508 = vmatpush.msra.mxu3 %v2485_v10 }
 0xed8   :  { %1961 = vmatmul.msk.f32.vlgmr.msrb.gmra.mxu3 %vm137_vm0, %v1356_v13 }
 0xed9   :  { %1691 = vmatpush.msrb.mxu3 %v2501_v20 }
 0xf53   :  { %v1208_v62 = vpop.f32.mrf.mxu3  ;;  %v1307_v25 = vpop.f32.mrf.mxu2 }
 0xf54   :  { %v2771_v63 = vadd.f32 %v2528_v22, %v1208_v62 }
 0xf56   :  { %v1213_v19 = vmul.f32 %v1212_v1, %v2771_v63  ;;  %v1215_v2 = vsub.f32 %v2767_v61, %v2771_v63 }
 0xf58   :  { %v1214_v12 = vadd.f32 %v1213_v19, %v1211_v4  ;;  %v1216_v26 = vand.u32 2147483647, %v1215_v2 }
 0xf5a   :  { %1350 = vst.msk [vmem:[#allocation11 + $0x14] sm:$0xf] %vm200_vm2, %v1214_v12  ;;  %1956 = vmatmul.msk.f32.vlgmr.msrb.gmra.mxu0 %vm137_vm0, %v1214_v12 }
 0xf5b   :  { %1609 = vmatpush.msrb.mxu0 %v2458_v3  ;;  %v1377_v41 = vpop.f32.mrf.mxu3 }
 0xf5c   :  { %v1378_v42 = vadd.f32 %v2494_v11, %v1377_v41 }
 0xf5d   :  { %1610 = vmatpush.msrb.mxu0 %v2465_v5 }
 0xf5e   :  { %v1380_v44 = vmax.f32 %v1378_v42, 0.0 }
 0xf5f   :  { %1611 = vmatpush.msrb.mxu0 %v2474_v7 }
 0xf60   :  { %v1381_v49 = vsub.f32 0.0, %v1380_v44 }
 0xf61   :  { %1612 = vmatpush.msrb.mxu0 %v2483_v9 }
 0xf62   :  { %v1382_v52 = vmul.f32 1.442695, %v1381_v49 }
 0xfd7   :  { %v1287_v16 = vpop.f32.mrf.mxu0 }
 0xfd8   :  { %v1288_v21 = vadd.f32 %v1287_v16, %v1264_v15  ;;  %v2800_v15 = vld [vmem:[%s3021_s19 + $0x18] sm:$0xf]  ;;  %v2138_v16 = vld [vmem:[#allocation9 + $0x18] sm:$0xff] }
 0xfd9   :  { %1963 = vmatmul.msk.f32.vlgmr.msra.gmra.mxu0 %vm137_vm0, %v2800_v15 }
 0xfda   :  { %v1310_v30 = vadd.f32 %v1307_v25, %v1288_v21  ;;  %v2812_v21 = vld [vmem:[%s3022_s10 + $0x18] sm:$0xf]  ;;  %v1415_v25 = vsub.f32 1.0, %v2800_v15 }
 0xfdc   :  { %v1311_v0 = vadd.f32 %v2550_v35, %v1310_v30 }
 0xfde   :  { %2082 = vtanh.f32 %v1311_v0  ;;  %v1958_v5 = vmul.f32 -1.442695, %v1311_v0 }
 0xfe0   :  { %2084 = vpow2.f32 %v1958_v5  ;;  %v1559_v5 = vld [vmem:[#allocation3 + $0x1c] sm:$0xf] }
 0xfe4   :  { %v2083_v3 = vpop.eup %2082 }
 0xfe5   :  { %1334 = vrot.lane.b32.xlu1 %v2083_v3, %s2324_s24  ;;  %v1414_v3 = vmul.f32 %v2800_v15, %v2812_v21 }
 0xfe6   :  { %v2085_v7 = vpop.eup %2084 }
 0xfe7   :  { %v1315_v9 = vadd.f32 1.0, %v2085_v7 }
 0xfe9   :  { %2086 = vrcp.f32 %v1315_v9  ;;  %v1327_v46 = vand.u32 2147483648, %v1315_v9  ;;  %vm1321_vm11 = vweird.f32 %v1315_v9  ;;  %v1325_v47 = vand.u32 2147483647, %v1315_v9 }
 0xfea   :  { %2088 = vpow2.f32 %v1382_v52 }
 0xfeb   :  { %v1328_v54 = vor.u32 1.1754944e-38, %v1327_v46  ;;  %vm1326_vm13 = vcmp.eq.f32.partialorder %v1325_v47, 8.507059e+37 }
 0xfef   :  { %v2087_v34 = vpop.eup %2086 }
 0xff0   :  { %v1317_v38 = vmul.f32 %v2087_v34, %v1315_v9  ;;  %vm1322_vm10 = vweird.f32 %v2087_v34  ;;  %v2089_v58 = vpop.eup %2088 }
 0xff1   :  { %vm1323_vm12 = vmor %vm1321_vm11, %vm1322_vm10  ;;  %1385 = vrot.lane.b32.xlu1 %v2089_v58, %s2331_s23  ;;  %vm1757_vm11 = vcmask 0  }
 0xff2   :  { %v1318_v39 = vsub.f32 1.0, %v1317_v38 }
 0xff4   :  { %v1319_v20 = vmul.f32 %v2087_v34, %v1318_v39 }
 0xff6   :  { %v1320_v43 = vadd.f32 %v2087_v34, %v1319_v20 }
 0xff8   :  { %v1324_v50 = vsel %vm1323_vm12, %v2087_v34, %v1320_v43 }
 0xff9   :  { %v1329_v56 = vsel %vm1326_vm13, %v1328_v54, %v1324_v50  ;;  %v2139_v50 = vld [vmem:[%s3002_s6] ss:$0 sm:$0xff] }
 0xffa   :  { %v1332_v11 = vmul.f32 %v1329_v56, %v2743_v53 }
0x1056   :  { %v1467_v7 = vpop.f32.mrf.mxu0 }
0x1057   :  { %v1335_v55 = vpop.permute.xlu1 %1334 }
0x1058   :  { %v1337_v57 = vmul.f32 %v1335_v55, %v1329_v56 }
0x105a   :  { %1339 = vrot.lane.b32.xlu2 %v1337_v57, %s2330_s14 }
0x1063   :  { %v1386_v19 = vpop.permute.xlu1 %1385 }
0x10b4   :  { %v1340_v59 = vpop.permute.xlu2 %1339 }
0x10b5   :  { %v2792_v1 = vadd.f32 %v1340_v59, %v1332_v11 }
0x10b7   :  { %2090 = vtanh.f32 %v2792_v1 }
0x10bd   :  { %v2091_v62 = vpop.eup %2090 }
0x10be   :  { %1345 = vrot.lane.b32.xlu0 %v2091_v62, %s2324_s24 }
0x1130   :  { %v1346_v4 = vpop.permute.xlu0 %1345 }
0x1131   :  { %v1348_v12 = vmul.f32 %v1346_v4, %v1329_v56 }
0x1133   :  { %v1388_v13 = vmul.f32 %v1386_v19, %v1348_v12 }
0x1135   :  { %1390 = vrot.lane.b32.xlu2 %v1388_v13, %s2330_s14 }
0x118f   :  { %v1391_v53 = vpop.permute.xlu2 %1390 }
0x1190   :  { %1962 = vmatmul.msk.f32.vlgmr.msrb.gmra.mxu1 %vm169_vm1, %v1391_v53  ;;  %1965 = vmatmul.msk.f32.vlgmr.msra.gmra.mxu3 %vm169_vm1, %v1391_v53 }
0x1191   :  { %1708 = vmatpush.msrb.mxu1 %v2138_v16 }
0x1193   :  { %1709 = vmatpush.msrb.mxu1 %v2469_v6 }
0x1195   :  { %1710 = vmatpush.msrb.mxu1 %v2476_v8 }
0x1197   :  { %1711 = vmatpush.msrb.mxu1 %v2485_v10 }
0x1198   :  { %1969 = vmatmul.msk.f32.vlgmr.msra.gmra.mxu1 %vm137_vm0, %v1559_v5 }
0x120d   :  { %v1411_v30 = vpop.f32.mrf.mxu1 }
0x120e   :  { %v2816_v0 = vadd.f32 %v2528_v22, %v1411_v30 }
0x1210   :  { %v1416_v6 = vmul.f32 %v1415_v25, %v2816_v0  ;;  %v1418_v8 = vsub.f32 %v2812_v21, %v2816_v0 }
0x1212   :  { %v1417_v10 = vadd.f32 %v1416_v6, %v1414_v3 }
0x1213   :  { %v1510_v34 = vpop.f32.mrf.mxu3 }
0x1214   :  { %1553 = vst.msk [vmem:[#allocation11 + $0x18] sm:$0xf] %vm200_vm2, %v1417_v10  ;;  %1964 = vmatmul.msk.f32.vlgmr.msra.gmra.mxu2 %vm137_vm0, %v1417_v10 }
0x1215   :  { %v1580_v47 = vpop.f32.mrf.mxu1 }
0x1216   :  { %v1581_v52 = vadd.f32 %v2139_v50, %v1580_v47 }
0x1218   :  { %v1583_v54 = vmax.f32 %v1581_v52, 0.0  ;;  %v2141_v52 = vld [vmem:[%s3008_s12] ss:$0 sm:$0xff] }
0x121a   :  { %v1584_v55 = vsub.f32 0.0, %v1583_v54 }
0x121c   :  { %v1585_v56 = vmul.f32 1.442695, %v1584_v55 }
0x1297   :  { %v1490_v9 = vpop.f32.mrf.mxu2 }
0x1298   :  { %v1491_v22 = vadd.f32 %v1490_v9, %v1467_v7  ;;  %v2842_v7 = vld [vmem:[%s3021_s19 + $0x1c] sm:$0xf] }
0x1299   :  { %1971 = vmatmul.msk.f32.vlgmr.msrb.gmra.mxu2 %vm137_vm0, %v2842_v7  ;;  %v2851_v9 = vld [vmem:[%s3022_s10 + $0x1c] sm:$0xf] }
0x129a   :  { %v1513_v38 = vadd.f32 %v1510_v34, %v1491_v22  ;;  %v1618_v22 = vsub.f32 1.0, %v2842_v7 }
0x129c   :  { %v1514_v39 = vadd.f32 %v2550_v35, %v1513_v38  ;;  %v2140_v38 = vld [vmem:[%s3004_s8] ss:$0 sm:$0xff] }
0x129e   :  { %2092 = vtanh.f32 %v1514_v39  ;;  %v1966_v41 = vmul.f32 -1.442695, %v1514_v39 }
0x12a0   :  { %2094 = vpow2.f32 %v1966_v41 }
0x12a4   :  { %v2093_v20 = vpop.eup %2092 }
0x12a5   :  { %1537 = vrot.lane.b32.xlu0 %v2093_v20, %s2324_s24  ;;  %v1617_v20 = vmul.f32 %v2842_v7, %v2851_v9 }
0x12a6   :  { %v2095_v42 = vpop.eup %2094 }
0x12a7   :  { %v1518_v43 = vadd.f32 1.0, %v2095_v42 }
0x12a9   :  { %2096 = vrcp.f32 %v1518_v43  ;;  %v1530_v58 = vand.u32 2147483648, %v1518_v43  ;;  %vm1524_vm15 = vweird.f32 %v1518_v43  ;;  %v1528_v11 = vand.u32 2147483647, %v1518_v43 }
0x12aa   :  { %2098 = vpow2.f32 %v1585_v56 }
0x12ab   :  { %v1531_v62 = vor.u32 1.1754944e-38, %v1530_v58  ;;  %vm1529_vm4 = vcmp.eq.f32.partialorder %v1528_v11, 8.507059e+37 }
0x12af   :  { %v2097_v44 = vpop.eup %2096 }
0x12b0   :  { %v1520_v46 = vmul.f32 %v2097_v44, %v1518_v43  ;;  %vm1525_vm14 = vweird.f32 %v2097_v44  ;;  %v2099_v4 = vpop.eup %2098 }
0x12b1   :  { %vm1526_vm3 = vmor %vm1524_vm15, %vm1525_vm14  ;;  %1588 = vrot.lane.b32.xlu0 %v2099_v4, %s2331_s23 }
0x12b2   :  { %v1521_v49 = vsub.f32 1.0, %v1520_v46 }
0x12b4   :  { %v1522_v35 = vmul.f32 %v2097_v44, %v1521_v49 }
0x12b6   :  { %v1523_v57 = vadd.f32 %v2097_v44, %v1522_v35 }
0x12b8   :  { %v1527_v59 = vsel %vm1526_vm3, %v2097_v44, %v1523_v57 }
0x12b9   :  { %v1532_v12 = vsel %vm1529_vm4, %v1531_v62, %v1527_v59 }
0x12ba   :  { %v1535_v53 = vmul.f32 %v1532_v12, %v2792_v1 }
0x1317   :  { %v1538_v19 = vpop.permute.xlu0 %1537 }
0x1318   :  { %v1540_v13 = vmul.f32 %v1538_v19, %v1532_v12 }
0x131a   :  { %1542 = vrot.lane.b32.xlu1 %v1540_v13, %s2330_s14 }
0x131c   :  { %v1670_v44 = vpop.f32.mrf.mxu2 }
0x1323   :  { %v1589_v6 = vpop.permute.xlu0 %1588 }
0x138c   :  { %v1543_v16 = vpop.permute.xlu1 %1542 }
0x138d   :  { %v2834_v25 = vadd.f32 %v1543_v16, %v1535_v53 }
0x138f   :  { %2100 = vtanh.f32 %v2834_v25 }
0x1395   :  { %v2101_v30 = vpop.eup %2100 }
0x1396   :  { %1548 = vrot.lane.b32.xlu2 %v2101_v30, %s2324_s24 }
0x13f0   :  { %v1549_v3 = vpop.permute.xlu2 %1548 }
0x13f1   :  { %v1551_v10 = vmul.f32 %v1549_v3, %v1532_v12 }
0x13f3   :  { %v1591_v5 = vmul.f32 %v1589_v6, %v1551_v10  ;;  %v198_v6 = vand.u32 2147483647, %v197_v29  ;;  %v2142_v10 = vld [vmem:[%s3021_s19] sm:$0xf]  ;;  %v1217_v29 = vmul.f32 %v2752_v36, %v1216_v26 }
0x13f4   :  { %v212_v61 = vsel %vm200_vm2, %v2142_v10, 0.0 }
0x13f5   :  { %1593 = vrot.lane.b32.xlu1 %v1591_v5, %s2330_s14  ;;  %v199_v5 = vmul.f32 %v2142_v10, %v198_v6  ;;  %v1218_v18 = vsel %vm200_vm2, %v1217_v29, 0.0 }
0x1467   :  { %v1594_v1 = vpop.permute.xlu1 %1593 }
0x1468   :  { %1970 = vmatmul.msk.f32.vlgmr.msrb.gmra.mxu0 %vm169_vm1, %v1594_v1  ;;  %1973 = vmatmul.msk.f32.vlgmr.msrb.gmra.mxu1 %vm169_vm1, %v1594_v1  ;;  %v607_v1 = vand.u32 2147483647, %v606_v32 }
0x14e5   :  { %v1614_v34 = vpop.f32.mrf.mxu0  ;;  %v1713_v49 = vpop.f32.mrf.mxu1 }
0x14e6   :  { %v2857_v39 = vadd.f32 %v2140_v38, %v1614_v34  ;;  %v608_v34 = vmul.f32 %v2608_v60, %v607_v1 }
0x14e8   :  { %v1619_v41 = vmul.f32 %v1618_v22, %v2857_v39  ;;  %v1621_v42 = vsub.f32 %v2851_v9, %v2857_v39  ;;  %v201_v22 = vsel %vm200_vm2, %v199_v5, 0.0  ;;  %v609_v38 = vsel %vm200_vm2, %v608_v34, 0.0 }
0x14ea   :  { %v1620_v43 = vadd.f32 %v1619_v41, %v1617_v20 }
0x14ec   :  { %1756 = vst.msk [vmem:[#allocation11 + $0x1c] sm:$0xf] %vm200_vm2, %v1620_v43  ;;  %1972 = vmatmul.msk.f32.vlgmr.msrb.gmra.mxu3 %vm137_vm0, %v1620_v43 }
0x156f   :  { %v1693_v46 = vpop.f32.mrf.mxu3 }
0x1570   :  { %v1694_v47 = vadd.f32 %v1693_v46, %v1670_v44 }
0x1572   :  { %v1716_v50 = vadd.f32 %v1713_v49, %v1694_v47 }
0x1574   :  { %v1717_v54 = vadd.f32 %v2141_v52, %v1716_v50  ;;  %v1013_v50 = vand.u32 2147483647, %v1012_v51  ;;  %v404_v51 = vand.u32 2147483647, %v403_v28 }
0x1576   :  { %2102 = vtanh.f32 %v1717_v54  ;;  %v1974_v55 = vmul.f32 -1.442695, %v1717_v54  ;;  %v1014_v52 = vmul.f32 %v2711_v14, %v1013_v50 }
0x1578   :  { %2104 = vpow2.f32 %v1974_v55  ;;  %v1015_v54 = vsel %vm200_vm2, %v1014_v52, 0.0  ;;  %v1622_v55 = vand.u32 2147483647, %v1621_v42 }
0x157c   :  { %v2103_v35 = vpop.eup %2102 }
0x157d   :  { %1740 = vrot.lane.b32.xlu2 %v2103_v35, %s2324_s24  ;;  %v1229_v35 = vsel %vm200_vm2, %v2752_v36, 0.0  ;;  %v2143_v36 = vld [vmem:[%s3021_s19 + $0x4] sm:$0xf] }
0x157e   :  { %v2105_v56 = vpop.eup %2104  ;;  %v405_v9 = vmul.f32 %v2143_v36, %v404_v51 }
0x157f   :  { %v1721_v57 = vadd.f32 1.0, %v2105_v56 }
0x1580   :  { %v406_v42 = vsel %vm200_vm2, %v405_v9, 0.0 }
0x1581   :  { %2106 = vrcp.f32 %v1721_v57  ;;  %v1733_v19 = vand.u32 2147483648, %v1721_v57  ;;  %vm1727_vm5 = vweird.f32 %v1721_v57  ;;  %v1731_v12 = vand.u32 2147483647, %v1721_v57 }
0x1583   :  { %v1734_v53 = vor.u32 1.1754944e-38, %v1733_v19  ;;  %vm1732_vm7 = vcmp.eq.f32.partialorder %v1731_v12, 8.507059e+37  ;;  %v1761_v19 = vld [vmem:[%s3009_s13 + $0x10] sm:$0xff] }
0x1587   :  { %v2107_v58 = vpop.eup %2106 }
0x1588   :  { %v1723_v11 = vmul.f32 %v2107_v58, %v1721_v57  ;;  %vm1728_vm0 = vweird.f32 %v2107_v58  ;;  %v1432_v57 = vsel %vm200_vm2, %v2800_v15, 0.0 }
0x1589   :  { %vm1729_vm6 = vmor %vm1727_vm5, %vm1728_vm0 }
0x158a   :  { %v1724_v59 = vsub.f32 1.0, %v1723_v11 }
0x158c   :  { %v1725_v62 = vmul.f32 %v2107_v58, %v1724_v59 }
0x158e   :  { %v1726_v4 = vadd.f32 %v2107_v58, %v1725_v62  ;;  %v417_v62 = vsel %vm200_vm2, %v2143_v36, 0.0 }
0x1590   :  { %v1730_v13 = vsel %vm1729_vm6, %v2107_v58, %v1726_v4  ;;  %v1762_v4 = vld [vmem:[%s3009_s13 + $0x18] sm:$0xff] }
0x1591   :  { %v1735_v30 = vsel %vm1732_vm7, %v1734_v53, %v1730_v13  ;;  %1784 = vmatpush.msra.mxu0 %v1762_v4  ;;  %v1760_v13 = vld [vmem:[%s3009_s13 + $0x8] sm:$0xff]  ;;  %v811_v53 = vmul.f32 %v2656_v31, %v810_v24  ;;  %s1879_s13 = sshll.u32 %s3013_s17, 4  ;;  %s2334_s17 = smov [#allocation14]   ;;  %s1880_s13 = int_to_ptr.hbm [resolvable:$true] %s1879_s13 }
0x1592   :  { %v1738_v27 = vmul.f32 %v1735_v30, %v2834_v25  ;;  %v620_v25 = vsel %vm200_vm2, %v2608_v60, 0.0  ;;  %v1623_v60 = vmul.f32 %v2842_v7, %v1622_v55 }
0x1593   :  { %1785 = vmatpush.msra.mxu0 %v1761_v19  ;;  %v812_v37 = vsel %vm200_vm2, %v811_v53, 0.0 }
0x1594   :  { %v1624_v56 = vsel %vm200_vm2, %v1623_v60, 0.0 }
0x1595   :  { %1786 = vmatpush.msra.mxu0 %v1760_v13 }
0x1597   :  { %1787 = vmatpush.msra.mxu0 %v1759_v33 }
0x15d7   :  { %v1741_v16 = vpop.permute.xlu2 %1740 }
0x15d8   :  { %v1743_v3 = vmul.f32 %v1741_v16, %v1735_v30  ;;  %v1419_v16 = vand.u32 2147483647, %v1418_v8 }
0x15da   :  { %1745 = vrot.lane.b32.xlu0 %v1743_v3, %s2330_s14  ;;  %v1420_v31 = vmul.f32 %v2800_v15, %v1419_v16  ;;  %v1635_v3 = vsel %vm200_vm2, %v2842_v7, 0.0 }
0x1604   :  { %202 = vadd.xlane.f32.xlu0 %v201_v22 }
0x160c   :  { %610 = vadd.xlane.f32.xlu0 %v609_v38 }
0x1614   :  { %824 = vadd.xlane.f32.xlu0 %v823_v23 }
0x161c   :  { %1219 = vadd.xlane.f32.xlu0 %v1218_v18 }
0x1624   :  { %1433 = vadd.xlane.f32.xlu0 %v1432_v57 }
0x164c   :  { %v1746_v32 = vpop.permute.xlu0 %1745 }
0x164d   :  { %v1748_v20 = vadd.f32 %v1746_v32, %v1738_v27 }
0x164f   :  { %2108 = vtanh.f32 %v1748_v20 }
0x1655   :  { %v2109_v41 = vpop.eup %2108 }
0x1656   :  { %1751 = vrot.lane.b32.xlu1 %v2109_v41, %s2324_s24 }
0x1677   :  { %v203_v43 = vpop.xlane.xlu0 %202 }
0x1678   :  { %v204_v44 = vrot.slane %v203_v43, 4 }
0x167a   :  { %v205_v46 = vadd.f32 %v204_v44, %v203_v43 }
0x167c   :  { %v206_v47 = vrot.slane %v205_v46, 2 }
0x167e   :  { %v207_v63 = vadd.f32 %v206_v47, %v205_v46 }
0x167f   :  { %v611_v10 = vpop.xlane.xlu0 %610 }
0x1680   :  { %213 = vadd.xlane.f32.xlu1 %v212_v61  ;;  %v208_v2 = vrot.slane %v207_v63, 1  ;;  %v612_v1 = vrot.slane %v611_v10, 4 }
0x1682   :  { %v209_v49 = vadd.f32 %v208_v2, %v207_v63  ;;  %v613_v38 = vadd.f32 %v612_v1, %v611_v10 }
0x1684   :  { %1977 = vpush %v209_v49  ;;  %v614_v7 = vrot.slane %v613_v38, 2 }
0x1686   :  { %v615_v2 = vadd.f32 %v614_v7, %v613_v38 }
0x1687   :  { %v825_v21 = vpop.xlane.xlu0 %824 }
0x1688   :  { %621 = vadd.xlane.f32.xlu1 %v620_v25  ;;  %v826_v26 = vrot.slane %v825_v21, 4 }
0x168a   :  { %v827_v43 = vadd.f32 %v826_v26, %v825_v21 }
0x168c   :  { %v828_v50 = vrot.slane %v827_v43, 2 }
0x168e   :  { %v829_v36 = vadd.f32 %v828_v50, %v827_v43 }
0x168f   :  { %v1220_v44 = vpop.xlane.xlu0 %1219 }
0x1690   :  { %1016 = vadd.xlane.f32.xlu1 %v1015_v54  ;;  %v1221_v55 = vrot.slane %v1220_v44, 4 }
0x1698   :  { %1230 = vadd.xlane.f32.xlu1 %v1229_v35 }
0x16a0   :  { %1625 = vadd.xlane.f32.xlu1 %v1624_v56  ;;  %v616_v56 = vrot.slane %v615_v2, 1 }
0x16c8   :  { %v1752_v45 = vpop.permute.xlu1 %1751 }
0x16c9   :  { %v1754_v48 = vmul.f32 %v1752_v45, %v1735_v30  ;;  %v1421_v30 = vsel %vm200_vm2, %v1420_v31, 0.0 }
0x16cb   :  { %1768 = vrot.lane.b32.xlu2 %v1754_v48, %s2330_s14 }
0x16f3   :  { %v214_v39 = vpop.xlane.xlu1 %213 }
0x16f4   :  { %v215_v58 = vrot.slane %v214_v39, 4  ;;  %407 = vadd.xlane.f32.xlu2 %v406_v42 }
0x16f6   :  { %v216_v11 = vadd.f32 %v215_v58, %v214_v39  ;;  %v1434_v58 = vpop.xlane.xlu0 %1433 }
0x16f7   :  { %v1435_v4 = vrot.slane %v1434_v58, 4 }
0x16f8   :  { %v217_v59 = vrot.slane %v216_v11, 2 }
0x16fa   :  { %v218_v17 = vadd.f32 %v217_v59, %v216_v11  ;;  %v1222_v11 = vadd.f32 %v1221_v55, %v1220_v44  ;;  %v617_v59 = vadd.f32 %v616_v56, %v615_v2 }
0x16fb   :  { %v622_v5 = vpop.xlane.xlu1 %621 }
0x16fc   :  { %418 = vadd.xlane.f32.xlu2 %v417_v62  ;;  %v219_v28 = vrot.slane %v218_v17, 1  ;;  %v623_v14 = vrot.slane %v622_v5, 4  ;;  %v1223_v13 = vrot.slane %v1222_v11, 2 }
0x16fe   :  { %v220_v12 = vadd.f32 %v219_v28, %v218_v17  ;;  %v624_v34 = vadd.f32 %v623_v14, %v622_v5  ;;  %v830_v28 = vrot.slane %v829_v36, 1  ;;  %v1224_v5 = vadd.f32 %v1223_v13, %v1222_v11 }
0x1700   :  { %1979 = vpush %v220_v12  ;;  %v625_v29 = vrot.slane %v624_v34, 2  ;;  %v831_v31 = vadd.f32 %v830_v28, %v829_v36 }
0x1702   :  { %v626_v61 = vadd.f32 %v625_v29, %v624_v34 }
0x1703   :  { %v1017_v8 = vpop.xlane.xlu1 %1016 }
0x1704   :  { %813 = vadd.xlane.f32.xlu2 %v812_v37  ;;  %v1018_v32 = vrot.slane %v1017_v8, 4  ;;  %v627_v35 = vrot.slane %v626_v61, 1 }
0x1706   :  { %v1019_v49 = vadd.f32 %v1018_v32, %v1017_v8  ;;  %v628_v57 = vadd.f32 %v627_v35, %v626_v61  ;;  %v2948_v35 = vld [vmem:[%s3000_s4] sm:$0xf]  ;;  %s2952_s4 = spop %1977 }
0x1708   :  { %v1020_v45 = vrot.slane %v1019_v49, 2 }
0x170a   :  { %v1021_v17 = vadd.f32 %v1020_v45, %v1019_v49  ;;  %v2029_v45 = vld [vmem:[#allocation2] ss:$0 sm:$0xff] }
0x170b   :  { %v1231_v63 = vpop.xlane.xlu1 %1230 }
0x170c   :  { %1027 = vadd.xlane.f32.xlu2 %v1026_v40  ;;  %v1232_v52 = vrot.slane %v1231_v63, 4  ;;  %v1022_v16 = vrot.slane %v1021_v17, 1 }
0x170e   :  { %v1233_v9 = vadd.f32 %v1232_v52, %v1231_v63 }
0x1710   :  { %v1234_v19 = vrot.slane %v1233_v9, 2 }
0x1712   :  { %v1235_v10 = vadd.f32 %v1234_v19, %v1233_v9 }
0x1713   :  { %v1626_v24 = vpop.xlane.xlu1 %1625 }
0x1714   :  { %1422 = vadd.xlane.f32.xlu2 %v1421_v30  ;;  %v1627_v33 = vrot.slane %v1626_v24, 4  ;;  %v1436_v30 = vadd.f32 %v1435_v4, %v1434_v58  ;;  %v1236_v8 = vrot.slane %v1235_v10, 1 }
0x1716   :  { %v1628_v14 = vadd.f32 %v1627_v33, %v1626_v24  ;;  %v1437_v21 = vrot.slane %v1436_v30, 2  ;;  %v1792_v24 = vld [vmem:[%s2999_s3] sm:$0xf] }
0x1718   :  { %v1629_v38 = vrot.slane %v1628_v14, 2  ;;  %v1438_v29 = vadd.f32 %v1437_v21, %v1436_v30 }
0x171a   :  { %v1439_v43 = vrot.slane %v1438_v29, 1 }
0x171c   :  { %1636 = vadd.xlane.f32.xlu2 %v1635_v3  ;;  %v1440_v2 = vadd.f32 %v1439_v43, %v1438_v29 }
0x1725   :  { %v1769_v6 = vpop.permute.xlu2 %1768 }
0x1726   :  { %1975 = vmatmul.msk.f32.vlgmr.msra.gmra.mxu0 %vm169_vm1, %v1769_v6  ;;  %vm1809_vm1 = vcmask 3072  }
0x1727   :  { %v1810_v55 = vsel %vm1809_vm1, %v2948_v35, 0.0 }
0x1728   :  { %1811 = vadd.xlane.f32.xlu0 %v1810_v55 }
0x1731   :  { %s1980_s20 = spop %1979 }
0x1767   :  { %v408_v22 = vpop.xlane.xlu2 %407 }
0x1768   :  { %v409_v0 = vrot.slane %v408_v22, 4 }
0x176a   :  { %v410_v15 = vadd.f32 %v409_v0, %v408_v22  ;;  %v1023_v22 = vadd.f32 %v1022_v16, %v1021_v17 }
0x176c   :  { %v411_v23 = vrot.slane %v410_v15, 2 }
0x176e   :  { %v412_v18 = vadd.f32 %v411_v23, %v410_v15  ;;  %v1225_v15 = vrot.slane %v1224_v5, 1 }
0x176f   :  { %v419_v27 = vpop.xlane.xlu2 %418 }
0x1770   :  { %v420_v20 = vrot.slane %v419_v27, 4  ;;  %v413_v41 = vrot.slane %v412_v18, 1  ;;  %v1226_v32 = vadd.f32 %v1225_v15, %v1224_v5 }
0x1772   :  { %v421_v46 = vadd.f32 %v420_v20, %v419_v27  ;;  %v414_v47 = vadd.f32 %v413_v41, %v412_v18  ;;  %v1237_v27 = vadd.f32 %v1236_v8, %v1235_v10  ;;  %v1630_v41 = vadd.f32 %v1629_v38, %v1628_v14 }
0x1774   :  { %v422_v25 = vrot.slane %v421_v46, 2  ;;  %1981 = vpush %v414_v47  ;;  %v1631_v63 = vrot.slane %v1630_v41, 1 }
0x1776   :  { %v423_v54 = vadd.f32 %v422_v25, %v421_v46  ;;  %v1632_v52 = vadd.f32 %v1631_v63, %v1630_v41 }
0x1777   :  { %v814_v60 = vpop.xlane.xlu2 %813 }
0x1778   :  { %v815_v48 = vrot.slane %v814_v60, 4  ;;  %v424_v51 = vrot.slane %v423_v54, 1 }
0x177a   :  { %v816_v39 = vadd.f32 %v815_v48, %v814_v60  ;;  %v425_v42 = vadd.f32 %v424_v51, %v423_v54 }
0x177c   :  { %v817_v62 = vrot.slane %v816_v39, 2  ;;  %1983 = vpush %v425_v42 }
0x177d   :  { %1985 = vpush %v617_v59 }
0x177e   :  { %1987 = vpush %v628_v57  ;;  %v818_v12 = vadd.f32 %v817_v62, %v816_v39 }
0x177f   :  { %v1028_v53 = vpop.xlane.xlu2 %1027 }
0x1780   :  { %v1029_v37 = vrot.slane %v1028_v53, 4  ;;  %v819_v40 = vrot.slane %v818_v12, 1 }
0x1782   :  { %v1030_v3 = vadd.f32 %v1029_v37, %v1028_v53  ;;  %v820_v6 = vadd.f32 %v819_v40, %v818_v12  ;;  %v222_v53 = vstv %s1980_s20  ;;  %s1863_s20 = sshll.u32 %s3011_s15, 4  ;;  %s1864_s20 = int_to_ptr.hbm [resolvable:$true] %s1863_s20 }
0x1783   :  { %v223_v16 = vadd.f32 1e-05, %v222_v53 }
0x1784   :  { %v1031_v1 = vrot.slane %v1030_v3, 2  ;;  %1989 = vpush %v820_v6 }
0x1785   :  { %1991 = vpush %v831_v31 }
0x1786   :  { %1993 = vpush %v1023_v22  ;;  %v1032_v0 = vadd.f32 %v1031_v1, %v1030_v3 }
0x1787   :  { %v1423_v34 = vpop.xlane.xlu2 %1422 }
0x1788   :  { %v1424_v23 = vrot.slane %v1423_v34, 4  ;;  %v1033_v26 = vrot.slane %v1032_v0, 1 }
0x178a   :  { %v1425_v18 = vadd.f32 %v1424_v23, %v1423_v34  ;;  %v1034_v7 = vadd.f32 %v1033_v26, %v1032_v0 }
0x178c   :  { %v1426_v20 = vrot.slane %v1425_v18, 2  ;;  %1995 = vpush %v1034_v7 }
0x178d   :  { %1997 = vpush %v1226_v32 }
0x178e   :  { %1999 = vpush %v1237_v27  ;;  %v1427_v44 = vadd.f32 %v1426_v20, %v1425_v18 }
0x178f   :  { %v1637_v46 = vpop.xlane.xlu2 %1636 }
0x1790   :  { %v1638_v47 = vrot.slane %v1637_v46, 4  ;;  %v1428_v61 = vrot.slane %v1427_v44, 1 }
0x1792   :  { %v1639_v49 = vadd.f32 %v1638_v47, %v1637_v46  ;;  %v1429_v25 = vadd.f32 %v1428_v61, %v1427_v44  ;;  %v211_v46 = vstv %s2952_s4 }
0x1794   :  { %v1640_v50 = vrot.slane %v1639_v49, 2  ;;  %2001 = vpush %v1429_v25 }
0x1795   :  { %2003 = vpush %v1440_v2 }
0x1796   :  { %v1641_v54 = vadd.f32 %v1640_v50, %v1639_v49  ;;  %2005 = vpush %v1632_v52 }
0x1798   :  { %v1642_v60 = vrot.slane %v1641_v54, 1 }
0x179a   :  { %v1643_v56 = vadd.f32 %v1642_v60, %v1641_v54 }
0x179c   :  { %2007 = vpush %v1643_v56 }
0x17a3   :  { %v1789_v48 = vpop.f32.mrf.mxu0 }
0x17a4   :  { %v1790_v51 = vadd.f32 %v2029_v45, %v1789_v48 }
0x17a5   :  { %s2954_s6 = spop %1981 }
0x17a6   :  { %v1794_v36 = vsub.f32 0.0, %v1790_v51  ;;  %v1976_v9 = vmul.f32 -1.442695, %v1790_v51  ;;  %v1796_v13 = vmul.f32 %v1792_v24, %v1790_v51  ;;  %v416_v20 = vstv %s2954_s6  ;;  %s2333_s6 = smov [#allocation11]  }
0x17a8   :  { %v1795_v39 = vmax.f32 %v1794_v36, 0.0  ;;  %2110 = vpow2.f32 %v1976_v9  ;;  %v1797_v3 = vsub.f32 %v1790_v51, %v1796_v13 }
0x17aa   :  { %v1799_v42 = vsub.f32 0.0, %v1795_v39  ;;  %v1802_v57 = vsub.f32 %v1794_v36, %v1795_v39  ;;  %v1798_v15 = vadd.f32 %v1797_v3, %v1795_v39 }
0x17ac   :  { %v1800_v58 = vmul.f32 1.442695, %v1799_v42  ;;  %v1803_v11 = vmul.f32 1.442695, %v1802_v57 }
0x17ad   :  { %s1984_s23 = spop %1983 }
0x17ae   :  { %v2111_v59 = vpop.eup %2110  ;;  %2112 = vpow2.f32 %v1803_v11  ;;  %s2959_s2 = spop %1985  ;;  %v427_v4 = vstv %s1984_s23  ;;  %s1861_s23 = sshll.u32 %s2333_s6, 4  ;;  %s1862_s23 = int_to_ptr.vmem [resolvable:$true] %s1861_s23 }
0x17af   :  { %v1840_v62 = vadd.f32 1.0, %v2111_v59  ;;  %2114 = vpow2.f32 %v1800_v58  ;;  %s1988_s11 = spop %1987  ;;  %v428_v37 = vadd.f32 1e-05, %v427_v4  ;;  %v619_v52 = vstv %s2959_s2 }
0x17b0   :  { %v630_v31 = vstv %s1988_s11 }
0x17b1   :  { %2116 = vrcp.f32 %v1840_v62  ;;  %v1852_v30 = vand.u32 2147483648, %v1840_v62  ;;  %v1850_v5 = vand.u32 2147483647, %v1840_v62  ;;  %v631_v14 = vadd.f32 1e-05, %v630_v31 }
0x17b2   :  { %vm1846_vm8 = vweird.f32 %v1840_v62  ;;  %1869 = dma.vmem_to_hbm [thread:$0]  %s1862_s23, 512, %s1864_s20, [#allocation5], %s2324_s24, %s2324_s24, %s2325_s25  }
0x17b3   :  { %v1853_v8 = vor.u32 1.1754944e-38, %v1852_v30  ;;  %vm1851_vm10 = vcmp.eq.f32.partialorder %v1850_v5, 8.507059e+37  ;;  %s1888_s24 = sshll.u32 %s2334_s17, 4  ;;  %s1889_s24 = int_to_ptr.vmem [resolvable:$true] %s1888_s24 }
0x17b4   :  { %v2113_v17 = vpop.eup %2112 }
0x17b5   :  { %v2115_v28 = vpop.eup %2114  ;;  %s2961_s8 = spop %1989 }
0x17b6   :  { %v1805_v19 = vadd.f32 %v2115_v28, %v2113_v17  ;;  %s1992_s10 = spop %1991  ;;  %v822_v54 = vstv %s2961_s8 }
0x17b7   :  { %v2117_v12 = vpop.eup %2116  ;;  %v833_v6 = vstv %s1992_s10  ;;  %s2963_s3 = spop %1993 }
0x17b8   :  { %v1842_v33 = vmul.f32 %v2117_v12, %v1840_v62  ;;  %2118 = vlog2.f32 %v1805_v19  ;;  %vm1847_vm2 = vweird.f32 %v2117_v12  ;;  %v834_v0 = vadd.f32 1e-05, %v833_v6 }
0x17b9   :  { %2120 = vrcp.f32 %v428_v37  ;;  %vm1848_vm9 = vmor %vm1846_vm8, %vm1847_vm2  ;;  %v1025_v60 = vstv %s2963_s3 }
0x17ba   :  { %v1843_v40 = vsub.f32 1.0, %v1842_v33  ;;  %2122 = vrcp.f32 %v223_v16 }
0x17bb   :  { %2124 = vrcp.f32 %v631_v14 }
0x17bc   :  { %v1844_v10 = vmul.f32 %v2117_v12, %v1843_v40  ;;  %2126 = vrcp.f32 %v834_v0 }
0x17bd   :  { %s1996_s12 = spop %1995 }
0x17be   :  { %v1845_v1 = vadd.f32 %v2117_v12, %v1844_v10  ;;  %v1036_v22 = vstv %s1996_s12  ;;  %s2965_s9 = spop %1997  ;;  %v2119_v21 = vpop.eup %2118 }
0x17bf   :  { %s2000_s5 = spop %1999  ;;  %v1807_v38 = vmul.f32 0.6931472, %v2119_v21  ;;  %v1037_v26 = vadd.f32 1e-05, %v1036_v22  ;;  %v2121_v18 = vpop.eup %2120  ;;  %v1228_v57 = vstv %s2965_s9 }
0x17c0   :  { %v1849_v34 = vsel %vm1848_vm9, %v2117_v12, %v1845_v1  ;;  %v1239_v7 = vstv %s2000_s5  ;;  %v2123_v32 = vpop.eup %2122  ;;  %v430_v41 = vmul.f32 %v2121_v18, %v416_v20  ;;  %v1812_v12 = vpop.xlane.xlu0 %1811 }
0x17c1   :  { %v1854_v23 = vsel %vm1851_vm10, %v1853_v8, %v1849_v34  ;;  %v1808_v29 = vadd.f32 %v1807_v38, %v1798_v15  ;;  %2128 = vrcp.f32 %v1037_v26  ;;  %v1240_v43 = vadd.f32 1e-05, %v1239_v7  ;;  %v2125_v61 = vpop.eup %2124 }
0x17c2   :  { %1856 = vst.msk [vmem:[%s3012_s16] sm:$0xf] %vm1809_vm1, %v1854_v23  ;;  %v225_v63 = vmul.f32 %v2123_v32, %v211_v46  ;;  %v2127_v49 = vpop.eup %2126  ;;  %v1813_v13 = vrot.slane %v1812_v12, 4 }
0x17c3   :  { %v1822_v27 = vmul.f32 %v1808_v29, %v2948_v35  ;;  %2130 = vrcp.f32 %v1240_v43  ;;  %v633_v35 = vmul.f32 %v2125_v61, %v619_v52  ;;  %v836_v55 = vmul.f32 %v2127_v49, %v822_v54 }
0x17c4   :  { %v431_v25 = vadd.f32 %v430_v41, %v225_v63  ;;  %v1814_v53 = vadd.f32 %v1813_v13, %v1812_v12 }
0x17c5   :  { %s2973_s14 = spop %2001  ;;  %v1823_v44 = vsel %vm1809_vm1, %v1822_v27, 0.0 }
0x17c6   :  { %s2004_s27 = spop %2003  ;;  %1824 = vadd.xlane.f32.xlu1 %v1823_v44  ;;  %v634_v56 = vadd.f32 %v633_v35, %v431_v25  ;;  %v1431_v58 = vstv %s2973_s14  ;;  %v1815_v33 = vrot.slane %v1814_v53, 2 }
0x17c7   :  { %v1442_v47 = vstv %s2004_s27  ;;  %v2129_v50 = vpop.eup %2128  ;;  %s2006_s16 = spop %2005 }
0x17c8   :  { %v1443_v2 = vadd.f32 1e-05, %v1442_v47  ;;  %v1039_v45 = vmul.f32 %v2129_v50, %v1025_v60  ;;  %v837_v9 = vadd.f32 %v836_v55, %v634_v56  ;;  %v1634_v24 = vstv %s2006_s16 }
0x17c9   :  { %v2131_v36 = vpop.eup %2130  ;;  %v1816_v37 = vadd.f32 %v1815_v33, %v1814_v53 }
0x17ca   :  { %2132 = vrcp.f32 %v1443_v2  ;;  %v1040_v42 = vadd.f32 %v1039_v45, %v837_v9  ;;  %v1242_v11 = vmul.f32 %v2131_v36, %v1228_v57 }
0x17cb   :  { %v1817_v40 = vrot.slane %v1816_v37, 1 }
0x17cc   :  { %v1243_v62 = vadd.f32 %v1242_v11, %v1040_v42 }
0x17cd   :  { %s2008_s28 = spop %2007  ;;  %v1818_v16 = vadd.f32 %v1817_v40, %v1816_v37 }
0x17ce   :  { %v1645_v48 = vstv %s2008_s28 }
0x17cf   :  { %v1646_v51 = vadd.f32 1e-05, %v1645_v48  ;;  %2009 = vpush %v1818_v16 }
0x17d0   :  { %v2133_v39 = vpop.eup %2132 }
0x17d1   :  { %2134 = vrcp.f32 %v1646_v51  ;;  %v1445_v59 = vmul.f32 %v2133_v39, %v1431_v58 }
0x17d3   :  { %v1446_v4 = vadd.f32 %v1445_v59, %v1243_v62 }
0x17d7   :  { %v2135_v17 = vpop.eup %2134 }
0x17d8   :  { %v1648_v28 = vmul.f32 %v2135_v17, %v1634_v24 }
0x17da   :  { %v1649_v19 = vadd.f32 %v1648_v28, %v1446_v4 }
0x17dc   :  { %1758 = vst.msk [vmem:[#allocation12] sm:$0x1] %vm1757_vm11, %v1649_v19 }
0x17dd   :  { %1882 = dma.vmem_to_hbm [thread:$0]  %s1878_s30, 16, %s1880_s13, [#allocation13]  }
0x1800   :  { %s2010_s15 = spop %2009 }
0x1801   :  { %v1820_v1 = vstv %s2010_s15 }
0x1802   :  { %v1821_v22 = vadd.f32 1e-05, %v1820_v1 }
0x1804   :  { %2136 = vrcp.f32 %v1821_v22 }
0x180a   :  { %v2137_v21 = vpop.eup %2136 }
0x1839   :  { %v1825_v31 = vpop.xlane.xlu1 %1824 }
0x183a   :  { %v1826_v30 = vrot.slane %v1825_v31, 4 }
0x183c   :  { %v1827_v3 = vadd.f32 %v1826_v30, %v1825_v31 }
0x183e   :  { %v1828_v6 = vrot.slane %v1827_v3, 2 }
0x1840   :  { %v1829_v10 = vadd.f32 %v1828_v6, %v1827_v3 }
0x1842   :  { %v1830_v5 = vrot.slane %v1829_v10, 1 }
0x1844   :  { %v1831_v14 = vadd.f32 %v1830_v5, %v1829_v10 }
0x1846   :  { %2011 = vpush %v1831_v14 }
0x1877   :  { %s2012_s2 = spop %2011 }
0x1878   :  { %v1833_v0 = vstv %s2012_s2 }
0x1879   :  { %v1835_v8 = vmul.f32 %v2137_v21, %v1833_v0 }
0x187b   :  { %1836 = vst.msk [vmem:[#allocation14] sm:$0x1] %vm1757_vm11, %v1835_v8 }
0x187c   :  { %1893 = dma.vmem_to_hbm [thread:$0]  %s1889_s24, 16, %s1891_s22, [#allocation13]  }
0x187d   :  { %2318 = dma.done.wait [#allocation5], 512  }
0x187e   :  { %2319 = vsyncadd [#allocation5], 4294966784 }
0x187f   :  { %2320 = dma.done.wait [#allocation13], 32  }
0x1880   :  { %2321 = vsyncadd [#allocation13], 4294967264 }
0x1881   :  { %1908 = vsyncpa [#allocation4], 1 }
0x1882   :  { %1909 = vsyncpa [#allocation7], 1 }
0x1883   :  { %1910 = vsyncpa [#allocation10], 1 }
0x1884   :  { %1911 = vsyncpa [#allocation5], 1 }
0x1885   :  { %1912 = vsyncpa [#allocation13], 1 }

</bundles_post_ra>
